<compile_context>
chip_gen: v6e
topology: v6e:2x2x1
jax: 0.10.0
libtpu: 0.0.40
codegen_flags: <defaults>
</compile_context>

<pallas_src>
import jax
import jax.numpy as jnp
import numpy as np
from jax.experimental import pallas as pl
from jax.experimental.pallas import tpu as pltpu

IN, H1, H2, OUT = 28 * 28, 128, 64, 10
H2P = 128          # hidden width padded to a full lane dimension
OUTP = 64          # class dim padded to half a lane dimension
PACK = 2 * OUTP    # packed output width: [mu(64) | sigma(64)] = 128 lanes


def vdp_fc_kernel(x_ref,
                  w1m_ref, w1s_ref, b1m_ref, b1s_ref,
                  w2m_ref, w2cat_ref, b2m_ref, b2s_ref,
                  w3m_ref, w3cat_ref, b3m_ref, b3s_ref,
                  out_ref):
    f32 = jnp.float32
    x = x_ref[...]  # (tb, 784) f32

    # ---- fc1 (input_flag=True: deterministic input, Var(x)=0) ----
    mu = jnp.dot(x, w1m_ref[...], preferred_element_type=f32) + b1m_ref[...]
    sig = jnp.dot(x * x, w1s_ref[...], preferred_element_type=f32) + b1s_ref[...]

    # ---- ReLU moment propagation ----
    gate = (mu > 0).astype(f32)
    mu = mu * gate
    sig = sig * gate

    # ---- fc2 (H2 padded to 128; sigma path fused: [sig+mu^2 | sig] @ [[sp(Ws)], [Wm^2]]) ----
    mu2 = jnp.dot(mu, w2m_ref[...], preferred_element_type=f32) + b2m_ref[...]
    lhs2 = jnp.concatenate([sig + mu * mu, sig], axis=1)            # (tb, 2*H1) lane-aligned
    sig2 = jnp.dot(lhs2, w2cat_ref[...], preferred_element_type=f32) + b2s_ref[...]

    gate2 = (mu2 > 0).astype(f32)
    mu2 = mu2 * gate2
    sig2 = sig2 * gate2

    # ---- fc3 (classes padded to OUTP=64; K = 2*H2P = 256, lane-aligned concat) ----
    mu3 = jnp.dot(mu2, w3m_ref[...], preferred_element_type=f32) + b3m_ref[...]
    lhs3 = jnp.concatenate([sig2 + mu2 * mu2, sig2], axis=1)        # (tb, 2*H2P)
    sig3 = jnp.dot(lhs3, w3cat_ref[...], preferred_element_type=f32) + b3s_ref[...]

    # ---- Softmax moment propagation over class dim ----
    # Padding columns carry a huge negative mu bias -> exp underflows to 0 -> p == 0,
    # so they contribute nothing to the denominator or to the Jacobian sum.
    z = mu3 - jnp.max(mu3, axis=-1, keepdims=True)
    e = jnp.exp(z)
    p = e / jnp.sum(e, axis=-1, keepdims=True)
    # diag(J diag(sigma3) J^T) with J_ij = p_i (delta_ij - p_j)
    s = jnp.sum(p * p * sig3, axis=-1, keepdims=True)
    sigma_out = p * p * (sig3 * (1.0 - 2.0 * p) + s)

    # ---- packed, lane-dense output: [mu | sigma] in one (tb, 128) slab ----
    out_ref[:, :OUTP] = p.astype(out_ref.dtype)
    out_ref[:, OUTP:] = sigma_out.astype(out_ref.dtype)


def vdp_fc_forward(x, params, *, tb=1024):
    """x: (B, 784) f32. Returns (mu, sigma), each (B, 10) f32.

    tb: max batch tile (multiple of 8). v6e/v5e can profitably use up to ~2048;
    v7x should stay <= ~2048 (64 MiB VMEM/TC).
    """
    B = x.shape[0]
    (w1m, w1s, b1m, b1s, w2m, w2s, b2m, b2s, w3m, w3s, b3m, b3s) = params

    # --- hoisted, loop-invariant weight transforms (done once, outside the grid loop) ---
    sp = jax.nn.softplus  # numerically safe softplus
    w1s_sp = sp(w1s)
    b1s_sp = sp(b1s)

    padh = H2P - H2     # zero-pad hidden width 64 -> 128 (exact-zero => no numeric change)
    padc = OUTP - OUT   # pad classes 10 -> 64

    w2m_p = jnp.pad(w2m, ((0, 0), (0, padh)))
    w2cat_p = jnp.pad(jnp.concatenate([sp(w2s), w2m * w2m], axis=0),
                      ((0, 0), (0, padh)))                       # (2*H1, H2P)
    b2m_p = jnp.pad(b2m, ((0, 0), (0, padh)))
    b2s_p = jnp.pad(sp(b2s), ((0, 0), (0, padh)))

    w3m_p = jnp.pad(w3m, ((0, padh), (0, padc)))                 # (H2P, OUTP)
    b3m_p = jnp.pad(b3m, ((0, 0), (0, padc)), constant_values=-1e30)  # pad classes -> p == 0
    w3s_sp_p = jnp.pad(sp(w3s), ((0, padh), (0, padc)))          # (H2P, OUTP)
    w3sq_p = jnp.pad(w3m * w3m, ((0, padh), (0, padc)))          # (H2P, OUTP)
    w3cat_p = jnp.concatenate([w3s_sp_p, w3sq_p], axis=0)        # (2*H2P, OUTP)
    b3s_p = jnp.pad(sp(b3s), ((0, 0), (0, padc)))

    # --- batch tiling: no padding of x; ragged last tile handled by Pallas boundary
    #     masking (rows are independent). Cap tb so the grid has >= 2 steps when B
    #     permits (keeps both v7x TensorCores busy under "parallel").
    tb = int(tb)
    tb = max(8, min(tb, 8 * pl.cdiv(pl.cdiv(B, 2), 8)))
    grid = (pl.cdiv(B, tb),)

    def full(shape):
        return pl.BlockSpec(shape, lambda i: (0, 0))

    grid_spec = pltpu.PrefetchScalarGridSpec(
        num_scalar_prefetch=0,
        grid=grid,
        in_specs=[
            pl.BlockSpec((tb, IN), lambda i: (i, 0)),
            full((IN, H1)), full((IN, H1)), full((1, H1)), full((1, H1)),
            full((H1, H2P)), full((2 * H1, H2P)), full((1, H2P)), full((1, H2P)),
            full((H2P, OUTP)), full((2 * H2P, OUTP)),
            full((1, OUTP)), full((1, OUTP)),
        ],
        out_specs=pl.BlockSpec((tb, PACK), lambda i: (i, 0)),
    )

    # Advisory cost estimate for XLA's scheduler around the custom call.
    flops_per_row = (2 * IN * H1 * 2            # fc1 mu + fc1 sigma
                     + 2 * H1 * H2P             # fc2 mu
                     + 2 * (2 * H1) * H2P       # fc2 sigma (fused)
                     + 2 * H2P * OUTP           # fc3 mu
                     + 2 * (2 * H2P) * OUTP)    # fc3 sigma (fused)
    weight_elems = (2 * IN * H1 + 2 * H1
                    + H1 * H2P + 2 * H1 * H2P + 2 * H2P
                    + H2P * OUTP + 2 * H2P * OUTP + 2 * OUTP)
    cost = pl.CostEstimate(
        flops=B * flops_per_row,
        transcendentals=B * OUTP,
        bytes_accessed=4 * (B * IN + B * PACK + weight_elems),
    )

    out = pl.pallas_call(
        vdp_fc_kernel,
        out_shape=jax.ShapeDtypeStruct((B, PACK), jnp.float32),
        grid_spec=grid_spec,
        compiler_params=pltpu.CompilerParams(
            dimension_semantics=("parallel",),       # batch axis -> megacore on v7x
            vmem_limit_bytes=48 * 1024 * 1024),      # needed on v5e (16 MiB default); <64 MiB for v7x
        cost_estimate=cost,
    )(x, w1m, w1s_sp, b1m, b1s_sp,
      w2m_p, w2cat_p, b2m_p, b2s_p,
      w3m_p, w3cat_p, b3m_p, b3s_p)

    mu = out[:, :OUT]
    sigma = out[:, OUTP:OUTP + OUT]
    return mu, sigma


def init_params(key):
    ks = jax.random.split(key, 6)

    def lin(kw, kb, fan_in, fan_out):
        wm = jax.random.normal(kw, (fan_in, fan_out), jnp.float32) / jnp.sqrt(
            jnp.float32(fan_in))
        ws = jnp.full((fan_in, fan_out), -4.0, jnp.float32)  # raw (pre-softplus) variance
        bm = jax.random.normal(kb, (1, fan_out), jnp.float32) * 0.01
        bs = jnp.full((1, fan_out), -4.0, jnp.float32)
        return wm, ws, bm, bs

    p1 = lin(ks[0], ks[1], IN, H1)
    p2 = lin(ks[2], ks[3], H1, H2)
    p3 = lin(ks[4], ks[5], H2, OUT)
    return (*p1, *p2, *p3)


def vdp_fc_reference(x, params):
    """Pure-JAX reference with identical VDP moment-propagation semantics."""
    (w1m, w1s, b1m, b1s, w2m, w2s, b2m, b2s, w3m, w3s, b3m, b3s) = params
    sp = jax.nn.softplus

    mu = x @ w1m + b1m
    sig = (x * x) @ sp(w1s) + sp(b1s)
    g = (mu > 0).astype(jnp.float32)
    mu, sig = mu * g, sig * g

    mu2 = mu @ w2m + b2m
    sig2 = (sig + mu * mu) @ sp(w2s) + sig @ (w2m * w2m) + sp(b2s)
    g2 = (mu2 > 0).astype(jnp.float32)
    mu2, sig2 = mu2 * g2, sig2 * g2

    mu3 = mu2 @ w3m + b3m
    sig3 = (sig2 + mu2 * mu2) @ sp(w3s) + sig2 @ (w3m * w3m) + sp(b3s)

    p = jax.nn.softmax(mu3, axis=-1)
    s = jnp.sum(p * p * sig3, axis=-1, keepdims=True)
    sig_out = p * p * (sig3 * (1.0 - 2.0 * p) + s)
    return p, sig_out


if __name__ == "__main__":
    # TODO(synk): get_loss (vdp.ELBOLoss / gather_kl) and score() are training-time
    # utilities, not part of forward(); intentionally not implemented.
    key = jax.random.PRNGKey(0)
    kx, kp = jax.random.split(key)

    B = 60  # intentionally ragged vs. the tile to exercise the masked last block
    x = jax.random.uniform(kx, (B, IN), jnp.float32)  # MNIST-like pixels in [0,1)
    params = init_params(kp)

    mu_out, sigma_out = vdp_fc_forward(x, params, tb=1024)
    mu_out, sigma_out = jax.block_until_ready((mu_out, sigma_out))

    mu_ref, sigma_ref = vdp_fc_reference(x, params)
    np.testing.assert_allclose(np.asarray(mu_out), np.asarray(mu_ref),
                               rtol=1e-5, atol=1e-6)
    np.testing.assert_allclose(np.asarray(sigma_out), np.asarray(sigma_ref),
                               rtol=1e-4, atol=1e-5)
    # softmax means must sum to 1
    np.testing.assert_allclose(np.asarray(mu_out).sum(-1), np.ones(B), rtol=1e-5)

    print("KERNEL_OK")
</pallas_src>

<mosaic_0001>
module attributes {stable_mosaic.version = 11 : i64} {
  func.func @vdp_fc_kernel(%arg0: i32, %arg1: memref<32x784xf32, #tpu.memory_space<vmem>>, %arg2: memref<784x128xf32, #tpu.memory_space<vmem>>, %arg3: memref<784x128xf32, #tpu.memory_space<vmem>>, %arg4: memref<1x128xf32, #tpu.memory_space<vmem>>, %arg5: memref<1x128xf32, #tpu.memory_space<vmem>>, %arg6: memref<128x128xf32, #tpu.memory_space<vmem>>, %arg7: memref<256x128xf32, #tpu.memory_space<vmem>>, %arg8: memref<1x128xf32, #tpu.memory_space<vmem>>, %arg9: memref<1x128xf32, #tpu.memory_space<vmem>>, %arg10: memref<128x64xf32, #tpu.memory_space<vmem>>, %arg11: memref<256x64xf32, #tpu.memory_space<vmem>>, %arg12: memref<1x64xf32, #tpu.memory_space<vmem>>, %arg13: memref<1x64xf32, #tpu.memory_space<vmem>>, %arg14: memref<32x128xf32, #tpu.memory_space<vmem>>) attributes {dimension_semantics = [#tpu.dimension_semantics<parallel>], iteration_bounds = array<i64: 2>, scalar_prefetch = 0 : i64, scratch_operands = 0 : i64, tpu.core_type = #tpu.core_type<tc>, window_params = [{transform_indices = @transform_0, window_bounds = array<i64: 32, 784>}, {pipeline_mode = #tpu.pipeline_mode<synchronous>, transform_indices = @transform_1, window_bounds = array<i64: 784, 128>}, {pipeline_mode = #tpu.pipeline_mode<synchronous>, transform_indices = @transform_2, window_bounds = array<i64: 784, 128>}, {pipeline_mode = #tpu.pipeline_mode<synchronous>, transform_indices = @transform_3, window_bounds = array<i64: 1, 128>}, {pipeline_mode = #tpu.pipeline_mode<synchronous>, transform_indices = @transform_4, window_bounds = array<i64: 1, 128>}, {pipeline_mode = #tpu.pipeline_mode<synchronous>, transform_indices = @transform_5, window_bounds = array<i64: 128, 128>}, {pipeline_mode = #tpu.pipeline_mode<synchronous>, transform_indices = @transform_6, window_bounds = array<i64: 256, 128>}, {pipeline_mode = #tpu.pipeline_mode<synchronous>, transform_indices = @transform_7, window_bounds = array<i64: 1, 128>}, {pipeline_mode = #tpu.pipeline_mode<synchronous>, transform_indices = @transform_8, window_bounds = array<i64: 1, 128>}, {pipeline_mode = #tpu.pipeline_mode<synchronous>, transform_indices = @transform_9, window_bounds = array<i64: 128, 64>}, {pipeline_mode = #tpu.pipeline_mode<synchronous>, transform_indices = @transform_10, window_bounds = array<i64: 256, 64>}, {pipeline_mode = #tpu.pipeline_mode<synchronous>, transform_indices = @transform_11, window_bounds = array<i64: 1, 64>}, {pipeline_mode = #tpu.pipeline_mode<synchronous>, transform_indices = @transform_12, window_bounds = array<i64: 1, 64>}, {transform_indices = @transform_13, window_bounds = array<i64: 32, 128>}]} {
    %c0 = arith.constant 0 : index
    %c0_0 = arith.constant 0 : index
    %0 = vector.load %arg1[%c0, %c0_0] : memref<32x784xf32, #tpu.memory_space<vmem>>, vector<32x784xf32>
    %c0_1 = arith.constant 0 : index
    %c0_2 = arith.constant 0 : index
    %1 = vector.load %arg2[%c0_1, %c0_2] : memref<784x128xf32, #tpu.memory_space<vmem>>, vector<784x128xf32>
    %cst = arith.constant dense<0.000000e+00> : vector<32x128xf32>
    %2 = tpu.matmul %0, %1, %cst {dimension_numbers = #tpu.dot_dimension_numbers<[1], [0], [0], [1], [0, 0, 1, 1], [], []>} : vector<32x784xf32>, vector<784x128xf32>, vector<32x128xf32> -> vector<32x128xf32>
    %c0_3 = arith.constant 0 : index
    %c0_4 = arith.constant 0 : index
    %3 = vector.load %arg4[%c0_3, %c0_4] : memref<1x128xf32, #tpu.memory_space<vmem>>, vector<1x128xf32>
    %4 = vector.broadcast %3 : vector<1x128xf32> to vector<32x128xf32>
    %5 = arith.addf %2, %4 : vector<32x128xf32>
    %6 = arith.mulf %0, %0 : vector<32x784xf32>
    %c0_5 = arith.constant 0 : index
    %c0_6 = arith.constant 0 : index
    %7 = vector.load %arg3[%c0_5, %c0_6] : memref<784x128xf32, #tpu.memory_space<vmem>>, vector<784x128xf32>
    %cst_7 = arith.constant dense<0.000000e+00> : vector<32x128xf32>
    %8 = tpu.matmul %6, %7, %cst_7 {dimension_numbers = #tpu.dot_dimension_numbers<[1], [0], [0], [1], [0, 0, 1, 1], [], []>} : vector<32x784xf32>, vector<784x128xf32>, vector<32x128xf32> -> vector<32x128xf32>
    %c0_8 = arith.constant 0 : index
    %c0_9 = arith.constant 0 : index
    %9 = vector.load %arg5[%c0_8, %c0_9] : memref<1x128xf32, #tpu.memory_space<vmem>>, vector<1x128xf32>
    %10 = vector.broadcast %9 : vector<1x128xf32> to vector<32x128xf32>
    %11 = arith.addf %8, %10 : vector<32x128xf32>
    %cst_10 = arith.constant 0.000000e+00 : f32
    %12 = vector.broadcast %cst_10 : f32 to vector<32x128xf32>
    %13 = arith.cmpf ogt, %5, %12 : vector<32x128xf32>
    %14 = arith.extui %13 : vector<32x128xi1> to vector<32x128xi32>
    %15 = arith.sitofp %14 : vector<32x128xi32> to vector<32x128xf32>
    %16 = arith.mulf %5, %15 : vector<32x128xf32>
    %17 = arith.mulf %11, %15 : vector<32x128xf32>
    %c0_11 = arith.constant 0 : index
    %c0_12 = arith.constant 0 : index
    %18 = vector.load %arg6[%c0_11, %c0_12] : memref<128x128xf32, #tpu.memory_space<vmem>>, vector<128x128xf32>
    %cst_13 = arith.constant dense<0.000000e+00> : vector<32x128xf32>
    %19 = tpu.matmul %16, %18, %cst_13 {dimension_numbers = #tpu.dot_dimension_numbers<[1], [0], [0], [1], [0, 0, 1, 1], [], []>} : vector<32x128xf32>, vector<128x128xf32>, vector<32x128xf32> -> vector<32x128xf32>
    %c0_14 = arith.constant 0 : index
    %c0_15 = arith.constant 0 : index
    %20 = vector.load %arg8[%c0_14, %c0_15] : memref<1x128xf32, #tpu.memory_space<vmem>>, vector<1x128xf32>
    %21 = vector.broadcast %20 : vector<1x128xf32> to vector<32x128xf32>
    %22 = arith.addf %19, %21 : vector<32x128xf32>
    %23 = arith.mulf %16, %16 : vector<32x128xf32>
    %24 = arith.addf %17, %23 : vector<32x128xf32>
    %25 = tpu.concatenate %24, %17 in 1 : vector<32x128xf32>, vector<32x128xf32> -> vector<32x256xf32>
    %c0_16 = arith.constant 0 : index
    %c0_17 = arith.constant 0 : index
    %26 = vector.load %arg7[%c0_16, %c0_17] : memref<256x128xf32, #tpu.memory_space<vmem>>, vector<256x128xf32>
    %cst_18 = arith.constant dense<0.000000e+00> : vector<32x128xf32>
    %27 = tpu.matmul %25, %26, %cst_18 {dimension_numbers = #tpu.dot_dimension_numbers<[1], [0], [0], [1], [0, 0, 1, 1], [], []>} : vector<32x256xf32>, vector<256x128xf32>, vector<32x128xf32> -> vector<32x128xf32>
    %c0_19 = arith.constant 0 : index
    %c0_20 = arith.constant 0 : index
    %28 = vector.load %arg9[%c0_19, %c0_20] : memref<1x128xf32, #tpu.memory_space<vmem>>, vector<1x128xf32>
    %29 = vector.broadcast %28 : vector<1x128xf32> to vector<32x128xf32>
    %30 = arith.addf %27, %29 : vector<32x128xf32>
    %cst_21 = arith.constant 0.000000e+00 : f32
    %31 = vector.broadcast %cst_21 : f32 to vector<32x128xf32>
    %32 = arith.cmpf ogt, %22, %31 : vector<32x128xf32>
    %33 = arith.extui %32 : vector<32x128xi1> to vector<32x128xi32>
    %34 = arith.sitofp %33 : vector<32x128xi32> to vector<32x128xf32>
    %35 = arith.mulf %22, %34 : vector<32x128xf32>
    %36 = arith.mulf %30, %34 : vector<32x128xf32>
    %c0_22 = arith.constant 0 : index
    %c0_23 = arith.constant 0 : index
    %37 = vector.load %arg10[%c0_22, %c0_23] : memref<128x64xf32, #tpu.memory_space<vmem>>, vector<128x64xf32>
    %cst_24 = arith.constant dense<0.000000e+00> : vector<32x64xf32>
    %38 = tpu.matmul %35, %37, %cst_24 {dimension_numbers = #tpu.dot_dimension_numbers<[1], [0], [0], [1], [0, 0, 1, 1], [], []>} : vector<32x128xf32>, vector<128x64xf32>, vector<32x64xf32> -> vector<32x64xf32>
    %c0_25 = arith.constant 0 : index
    %c0_26 = arith.constant 0 : index
    %39 = vector.load %arg12[%c0_25, %c0_26] : memref<1x64xf32, #tpu.memory_space<vmem>>, vector<1x64xf32>
    %40 = vector.broadcast %39 : vector<1x64xf32> to vector<32x64xf32>
    %41 = arith.addf %38, %40 : vector<32x64xf32>
    %42 = arith.mulf %35, %35 : vector<32x128xf32>
    %43 = arith.addf %36, %42 : vector<32x128xf32>
    %44 = tpu.concatenate %43, %36 in 1 : vector<32x128xf32>, vector<32x128xf32> -> vector<32x256xf32>
    %c0_27 = arith.constant 0 : index
    %c0_28 = arith.constant 0 : index
    %45 = vector.load %arg11[%c0_27, %c0_28] : memref<256x64xf32, #tpu.memory_space<vmem>>, vector<256x64xf32>
    %cst_29 = arith.constant dense<0.000000e+00> : vector<32x64xf32>
    %46 = tpu.matmul %44, %45, %cst_29 {dimension_numbers = #tpu.dot_dimension_numbers<[1], [0], [0], [1], [0, 0, 1, 1], [], []>} : vector<32x256xf32>, vector<256x64xf32>, vector<32x64xf32> -> vector<32x64xf32>
    %c0_30 = arith.constant 0 : index
    %c0_31 = arith.constant 0 : index
    %47 = vector.load %arg13[%c0_30, %c0_31] : memref<1x64xf32, #tpu.memory_space<vmem>>, vector<1x64xf32>
    %48 = vector.broadcast %47 : vector<1x64xf32> to vector<32x64xf32>
    %49 = arith.addf %46, %48 : vector<32x64xf32>
    %cst_32 = arith.constant dense<0xFF800000> : vector<32xf32>
    %50 = vector.multi_reduction <maximumf>, %41, %cst_32 [1] : vector<32x64xf32> to vector<32xf32>
    %51 = vector.shape_cast %50 : vector<32xf32> to vector<32x1xf32>
    %52 = vector.broadcast %51 : vector<32x1xf32> to vector<32x64xf32>
    %53 = arith.subf %41, %52 : vector<32x64xf32>
    %54 = math.exp %53 : vector<32x64xf32>
    %cst_33 = arith.constant dense<0.000000e+00> : vector<32xf32>
    %55 = vector.multi_reduction <add>, %54, %cst_33 [1] : vector<32x64xf32> to vector<32xf32>
    %56 = vector.shape_cast %55 : vector<32xf32> to vector<32x1xf32>
    %57 = vector.broadcast %56 : vector<32x1xf32> to vector<32x64xf32>
    %58 = arith.divf %54, %57 : vector<32x64xf32>
    %59 = arith.mulf %58, %58 : vector<32x64xf32>
    %60 = arith.mulf %59, %49 : vector<32x64xf32>
    %cst_34 = arith.constant dense<0.000000e+00> : vector<32xf32>
    %61 = vector.multi_reduction <add>, %60, %cst_34 [1] : vector<32x64xf32> to vector<32xf32>
    %62 = vector.shape_cast %61 : vector<32xf32> to vector<32x1xf32>
    %63 = arith.mulf %58, %58 : vector<32x64xf32>
    %cst_35 = arith.constant 2.000000e+00 : f32
    %64 = vector.broadcast %cst_35 : f32 to vector<32x64xf32>
    %65 = arith.mulf %64, %58 : vector<32x64xf32>
    %cst_36 = arith.constant 1.000000e+00 : f32
    %66 = vector.broadcast %cst_36 : f32 to vector<32x64xf32>
    %67 = arith.subf %66, %65 : vector<32x64xf32>
    %68 = arith.mulf %49, %67 : vector<32x64xf32>
    %69 = vector.broadcast %62 : vector<32x1xf32> to vector<32x64xf32>
    %70 = arith.addf %68, %69 : vector<32x64xf32>
    %71 = arith.mulf %63, %70 : vector<32x64xf32>
    %c0_37 = arith.constant 0 : index
    %c0_38 = arith.constant 0 : index
    %72 = vector.load %arg14[%c0_37, %c0_38] : memref<32x128xf32, #tpu.memory_space<vmem>>, vector<32x64xf32>
    tpu.vector_store %arg14[%c0_37, %c0_38], %58 {strides = array<i32>} : memref<32x128xf32, #tpu.memory_space<vmem>>, vector<32x64xf32>,
    %c0_39 = arith.constant 0 : index
    %c64 = arith.constant 64 : index
    %73 = vector.load %arg14[%c0_39, %c64] : memref<32x128xf32, #tpu.memory_space<vmem>>, vector<32x64xf32>
    tpu.vector_store %arg14[%c0_39, %c64], %71 {strides = array<i32>} : memref<32x128xf32, #tpu.memory_space<vmem>>, vector<32x64xf32>,
    return
  }
  func.func @transform_0(%arg0: i32) -> (i32, i32) {
    %c0_i32 = arith.constant 0 : i32
    %c0_i32_0 = arith.constant 0 : i32
    return %arg0, %c0_i32 : i32, i32
  }
  func.func @transform_1(%arg0: i32) -> (i32, i32) {
    %c0_i32 = arith.constant 0 : i32
    %c0_i32_0 = arith.constant 0 : i32
    %c0_i32_1 = arith.constant 0 : i32
    return %c0_i32, %c0_i32_0 : i32, i32
  }
  func.func @transform_2(%arg0: i32) -> (i32, i32) {
    %c0_i32 = arith.constant 0 : i32
    %c0_i32_0 = arith.constant 0 : i32
    %c0_i32_1 = arith.constant 0 : i32
    return %c0_i32, %c0_i32_0 : i32, i32
  }
  func.func @transform_3(%arg0: i32) -> (i32, i32) {
    %c0_i32 = arith.constant 0 : i32
    %c0_i32_0 = arith.constant 0 : i32
    %c0_i32_1 = arith.constant 0 : i32
    return %c0_i32, %c0_i32_0 : i32, i32
  }
  func.func @transform_4(%arg0: i32) -> (i32, i32) {
    %c0_i32 = arith.constant 0 : i32
    %c0_i32_0 = arith.constant 0 : i32
    %c0_i32_1 = arith.constant 0 : i32
    return %c0_i32, %c0_i32_0 : i32, i32
  }
  func.func @transform_5(%arg0: i32) -> (i32, i32) {
    %c0_i32 = arith.constant 0 : i32
    %c0_i32_0 = arith.constant 0 : i32
    %c0_i32_1 = arith.constant 0 : i32
    return %c0_i32, %c0_i32_0 : i32, i32
  }
  func.func @transform_6(%arg0: i32) -> (i32, i32) {
    %c0_i32 = arith.constant 0 : i32
    %c0_i32_0 = arith.constant 0 : i32
    %c0_i32_1 = arith.constant 0 : i32
    return %c0_i32, %c0_i32_0 : i32, i32
  }
  func.func @transform_7(%arg0: i32) -> (i32, i32) {
    %c0_i32 = arith.constant 0 : i32
    %c0_i32_0 = arith.constant 0 : i32
    %c0_i32_1 = arith.constant 0 : i32
    return %c0_i32, %c0_i32_0 : i32, i32
  }
  func.func @transform_8(%arg0: i32) -> (i32, i32) {
    %c0_i32 = arith.constant 0 : i32
    %c0_i32_0 = arith.constant 0 : i32
    %c0_i32_1 = arith.constant 0 : i32
    return %c0_i32, %c0_i32_0 : i32, i32
  }
  func.func @transform_9(%arg0: i32) -> (i32, i32) {
    %c0_i32 = arith.constant 0 : i32
    %c0_i32_0 = arith.constant 0 : i32
    %c0_i32_1 = arith.constant 0 : i32
    return %c0_i32, %c0_i32_0 : i32, i32
  }
  func.func @transform_10(%arg0: i32) -> (i32, i32) {
    %c0_i32 = arith.constant 0 : i32
    %c0_i32_0 = arith.constant 0 : i32
    %c0_i32_1 = arith.constant 0 : i32
    return %c0_i32, %c0_i32_0 : i32, i32
  }
  func.func @transform_11(%arg0: i32) -> (i32, i32) {
    %c0_i32 = arith.constant 0 : i32
    %c0_i32_0 = arith.constant 0 : i32
    %c0_i32_1 = arith.constant 0 : i32
    return %c0_i32, %c0_i32_0 : i32, i32
  }
  func.func @transform_12(%arg0: i32) -> (i32, i32) {
    %c0_i32 = arith.constant 0 : i32
    %c0_i32_0 = arith.constant 0 : i32
    %c0_i32_1 = arith.constant 0 : i32
    return %c0_i32, %c0_i32_0 : i32, i32
  }
  func.func @transform_13(%arg0: i32) -> (i32, i32) {
    %c0_i32 = arith.constant 0 : i32
    %c0_i32_0 = arith.constant 0 : i32
    return %arg0, %c0_i32 : i32, i32
  }
}

</mosaic_0001>

<bundles_post_ra>
// kernel: tpu_custom_call.1
= control target key start
LH: loop header
LB: loop body
LE: loop exit
PB: predicated region body
PF: predicated region fallthrough
CT: control target
= control target key end

     0   :  { %18 = vsyncpa [#allocation3], 0  ;;  %s3733_s0 = inlined_call_operand.vmem [shape: f32[60,784], index: 0, kind: input, shape index: {}]   ;;  %s3734_s1 = inlined_call_operand.hbm [shape: f32[784,128], index: 1, kind: input, shape index: {}]   ;;  %s3735_s2 = inlined_call_operand.hbm [shape: f32[784,128], index: 2, kind: input, shape index: {}]   ;;  %s3736_s3 = inlined_call_operand.vmem [shape: f32[1,128], index: 3, kind: input, shape index: {}]   ;;  %s3737_s4 = inlined_call_operand.vmem [shape: f32[1,128], index: 4, kind: input, shape index: {}]   ;;  %s3738_s5 = inlined_call_operand.hbm [shape: f32[128,128], index: 5, kind: input, shape index: {}]   ;;  %s3739_s6 = inlined_call_operand.hbm [shape: f32[256,128], index: 6, kind: input, shape index: {}]   ;;  %s3740_s7 = inlined_call_operand.vmem [shape: f32[1,128], index: 7, kind: input, shape index: {}]   ;;  %s3741_s8 = inlined_call_operand.vmem [shape: f32[1,128], index: 8, kind: input, shape index: {}]   ;;  %s3742_s9 = inlined_call_operand.vmem [shape: f32[128,64], index: 9, kind: input, shape index: {}]   ;;  %s3743_s10 = inlined_call_operand.vmem [shape: f32[256,64], index: 10, kind: input, shape index: {}]   ;;  %s3744_s11 = inlined_call_operand.vmem [shape: f32[1,64], index: 11, kind: input, shape index: {}]   ;;  %s3745_s12 = inlined_call_operand.vmem [shape: f32[1,64], index: 12, kind: input, shape index: {}]   ;;  %s3746_s13 = inlined_call_operand.hbm [shape: f32[60,128], index: 13, kind: output, shape index: {}]  }
   0x1   :  { %19 = vsyncpa [#allocation6], 0 }
   0x2   :  { %20 = vsyncpa [#allocation9], 0 }
   0x3   :  { %21 = vsyncpa [#allocation4], 0 }
   0x4   :  { %23 = vsyncpa [#allocation4 + $0x1], 0  ;;  %s3127_s25 = smov 0   ;;  %s3129_s26 = smov 0  }
   0x5   :  { %s3131_s27 = smov 0   ;;  %s3133_s28 = smov 0  }
   0x6 LB: > { %3751 = sst [smem:[#allocation15_spill]] %s3040_s27  ;;  %s3148_s29 = sadd.s32 4294967295, %s3044_s28   ;;  %s3044_s28 = sphi %s3133_s28, %s3761_s28   ;;  %s3040_s27 = sphi %s3131_s27, %s3763_s27   ;;  %s3036_s26 = sphi %s3129_s26, %s3765_s26   ;;  %s3032_s25 = sphi %s3127_s25, %s3764_s25  }
   0x7   : > { %s2222_s30 = sadd.s32 4294967294, %s3044_s28   ;;  %s3152_s14 = sadd.s32 1, %s3044_s28  }
   0x8   : > { %3752 = sst [smem:[#allocation16_spill]] %s3152_s14  ;;  %s314_s15 = sadd.s32 1, %s3040_s27 }
   0x9   : > { %s311_s16 = ssub.s32 %s3044_s28, %s3152_s14  ;;  %p324_p0 = scmp.ne.s32.totalorder %s3040_s27, %s3036_s26 }
   0xa   : > { %p312_p1 = scmp.eq.s32.totalorder %s311_s16, 0  ;;  %p325_p2 = scmp.eq.s32.totalorder %s3148_s29, 1 }
   0xb   : > { %p330_p3 = scmp.ne.s32.totalorder %s3036_s26, %s3032_s25  ;;  %p331_p4 = scmp.eq.s32.totalorder %s2222_s30, 1 }
   0xc   : > { %s3163_s17 = scalar_select %p312_p1, %s3040_s27, %s314_s15  }
   0xd   : > { %p3165_p5 = por %p325_p2, %p324_p0  ;;  %p3169_p6 = por %p331_p4, %p330_p3 }
   0xe   : > { %3753 = sst [smem:[#allocation17_spill]] %s3163_s17  ;;  %p2223_p7 = scmp.ge.s32.totalorder %s3044_s28, 1 }
   0xf   : > { %s3755_s19 = scalar_select %p3169_p6, 1, 0 }
  0x10   : > { %p338_p8 = scmp.lt.s32.totalorder %s3044_s28, 3  ;;  %p2801_p9 = scmp.eq.s32.totalorder %s3148_s29, 0 }
  0x11   : > { %3756 = sst [smem:[#allocation18_spill]] %s3755_s19  ;;  %s3046_s21 = smov [#allocation5]  }
  0x12   : > { %p3176_p10 = pnand %p2223_p7, %p338_p8  ;;  %s363_s22 = sshll.u32 %s3046_s21, 4  ;;  %s364_s22 = int_to_ptr.vmem [resolvable:$true] %s363_s22 }
  0x13   : > { %s3047_s24 = smov [#allocation2]   ;;  %s3048_s15 = smov [#allocation7]  }
  0x14   : > { %p2784_p11 = pneg %p3176_p10  ;;  %s350_s30 = sshll.u32 %s3047_s24, 4  ;;  %s351_s30 = int_to_ptr.vmem [resolvable:$true] %s350_s30 }
  0x15   : > { %s382_s16 = sshll.u32 %s3048_s15, 4  ;;  %s2879_s17 = scalar_lea.vmem %s364_s22, 12544  ;;  %s383_s16 = int_to_ptr.vmem [resolvable:$true] %s382_s16 }
  0x16   : > { %p3184_p12 = pnand %p2801_p9, %p2784_p11  ;;  %p2880_p0 = scmp.ne.s32.totalorder %s364_s22, %s2879_s17 }
  0x17   : > { %p2887_p3 = scmp.lt.s32.totalorder %s364_s22, %s364_s22  ;;  %p2888_p4 = scmp.lt.s32.totalorder %s2879_s17, %s2879_s17 }
  0x18   : > { %p2870_p13 = pneg %p3184_p12 }
  0x19   : > { %p2889_p7 = por %p2888_p4, %p2887_p3 }
  0x1a   : > { %p2882_p1 = pnand %p2880_p0, %p2870_p13 }
  0x1c   : > { %p2883_p2 = pneg %p2882_p1 }
  0x1e   : > { %p2890_p8 = pnand %p2889_p7, %p2883_p2 }
  0x20   : > { %2893 = shalt.err (!%p2890_p8)
}
  0x21   : > { %s3049_s21 = smov 128   ;;  %s3050_s24 = smov 8  }
  0x22   : > { %2790 = dma.hbm_to_vmem [thread:$0]  (!%p3184_p12), %s3735_s2, 12544, %s364_s22, [#allocation6], %s3049_s21, %s3049_s21, %s3050_s24  }
  0x23   : > { %s2905_s14 = scalar_lea.vmem %s351_s30, 12544  ;;  %p2913_p2 = scmp.lt.s32.totalorder %s351_s30, %s351_s30 }
  0x24   : > { %p2906_p11 = scmp.ne.s32.totalorder %s351_s30, %s2905_s14  ;;  %p2914_p3 = scmp.lt.s32.totalorder %s2905_s14, %s2905_s14 }
  0x26   : > { %p2908_p0 = pnand %p2906_p11, %p2870_p13  ;;  %p2915_p4 = por %p2914_p3, %p2913_p2 }
  0x28   : > { %p2909_p1 = pneg %p2908_p0 }
  0x2a   : > { %p2916_p7 = pnand %p2915_p4, %p2909_p1 }
  0x2c   : > { %2919 = shalt.err (!%p2916_p7)
}
  0x2d   : > { %2787 = dma.hbm_to_vmem [thread:$0]  (!%p3184_p12), %s3734_s1, 12544, %s351_s30, [#allocation3], %s3049_s21, %s3049_s21, %s3050_s24  }
  0x2e   : > { %s2931_s27 = scalar_lea.vmem %s383_s16, 2048  ;;  %p2939_p2 = scmp.lt.s32.totalorder %s383_s16, %s383_s16 }
  0x2f   : > { %p2932_p8 = scmp.ne.s32.totalorder %s383_s16, %s2931_s27  ;;  %p2940_p1 = scmp.lt.s32.totalorder %s2931_s27, %s2931_s27 }
  0x31   : > { %p2934_p11 = pnand %p2932_p8, %p2870_p13  ;;  %p2941_p3 = por %p2940_p1, %p2939_p2 }
  0x33   : > { %p2935_p0 = pneg %p2934_p11 }
  0x35   : > { %p2942_p4 = pnand %p2941_p3, %p2935_p0 }
  0x37   : > { %2945 = shalt.err (!%p2942_p4)
}
  0x38   : > { %2793 = dma.hbm_to_vmem [thread:$0]  (!%p3184_p12), %s3738_s5, 2048, %s383_s16, [#allocation6], %s3049_s21, %s3049_s21, %s3050_s24  }
  0x39   : > { %s3051_s22 = smov [#allocation8]  }
  0x3a   : > { %s395_s30 = sshll.u32 %s3051_s22, 4  ;;  %s396_s30 = int_to_ptr.vmem [resolvable:$true] %s395_s30 }
  0x3b   : > { %s2957_s15 = scalar_lea.vmem %s396_s30, 4096  ;;  %p2965_p0 = scmp.lt.s32.totalorder %s396_s30, %s396_s30 }
  0x3c   : > { %p2958_p7 = scmp.ne.s32.totalorder %s396_s30, %s2957_s15  ;;  %p2966_p2 = scmp.lt.s32.totalorder %s2957_s15, %s2957_s15 }
  0x3e   : > { %p2960_p8 = pnand %p2958_p7, %p2870_p13  ;;  %p2967_p1 = por %p2966_p2, %p2965_p0 }
  0x40   : > { %p2961_p11 = pneg %p2960_p8 }
  0x42   : > { %p2968_p3 = pnand %p2967_p1, %p2961_p11 }
  0x44   : > { %2971 = shalt.err (!%p2968_p3)
}
  0x45   : > { %2796 = dma.hbm_to_vmem [thread:$0]  (!%p3184_p12), %s3739_s6, 4096, %s396_s30, [#allocation9], %s3049_s21, %s3049_s21, %s3050_s24  }
  0x46   : > { %439 = sbr.rel (%p3176_p10) target bundleno = 1360 (0x550), region = 72 }
  0x4b   : > { %3015 = dma.done.wait (%p2801_p9), [#allocation3], 12544  }
  0x4c   : > { %3017 = vsyncadd (%p2801_p9), [#allocation3], 4294954752 }
  0x4d   : > { %3019 = dma.done.wait (%p2801_p9), [#allocation6], 14592  }
  0x4e   : > { %3021 = vsyncadd (%p2801_p9), [#allocation6], 4294952704 }
  0x4f   : > { %3023 = dma.done.wait (%p2801_p9), [#allocation9], 4096  }
  0x50   : > { %3025 = vsyncadd (%p2801_p9), [#allocation9], 4294963200  ;;  %v563_v0 = vld [vmem:[#allocation2 + $0xf8] sm:$0xff]  ;;  %v562_v4 = vld [vmem:[#allocation2 + $0xf0] sm:$0xff]  ;;  %s2235_s20 = sshll.u32 %s3148_s29, 2  ;;  %vm637_vm0 = vcmask 130048  }
  0x51   : > { %v595_v1 = vld [vmem:[#allocation2 + $0x1f8] sm:$0xff]  ;;  %2265 = vmatprep.subr.mxu0 %v563_v0  ;;  %v594_v5 = vld [vmem:[#allocation2 + $0x1f0] sm:$0xff]  ;;  %v561_v8 = vld [vmem:[#allocation2 + $0xe8] sm:$0xff]  ;;  %p3251_p9 = scmp.lt.s32.totalorder %s2235_s20, 7  ;;  %vm1995_vm9 = vcmask 523264   ;;  %s493_s27 = sand.u32 1, %s3036_s26  }
  0x52   : > { %v547_v2 = vld [vmem:[#allocation2 + $0x78] sm:$0xff]  ;;  %2309 = vmatprep.subr.mxu1 %v595_v1  ;;  %v546_v6 = vld [vmem:[#allocation2 + $0x70] sm:$0xff]  ;;  %v593_v9 = vld [vmem:[#allocation2 + $0x1e8] sm:$0xff]  ;;  %s3053_s15 = smov 64   ;;  %vm2100_vm10 = vcmask 1048064   ;;  %s2264_s16 = sshll.u32 %s3148_s29, 9 }
  0x53   : > { %v579_v3 = vld [vmem:[#allocation2 + $0x178] sm:$0xff]  ;;  %2266 = vmatpush3.msra.mxu0 %v547_v2  ;;  %v578_v7 = vld [vmem:[#allocation2 + $0x170] sm:$0xff]  ;;  %v545_v10 = vld [vmem:[#allocation2 + $0x68] sm:$0xff]  ;;  %s3767_s20 = smov (!%p3251_p9, %s2235_s20), 7  ;;  %s3693_s24 = scalar_lea.sflag [#allocation4], %s493_s27 }
  0x54   : > { %2310 = vmatpush3.msra.mxu1 %v579_v3  ;;  %2267 = vmatprep.subr.mxu0 %v562_v4  ;;  %v577_v11 = vld [vmem:[#allocation2 + $0x168] sm:$0xff]  ;;  %v560_v12 = vld [vmem:[#allocation2 + $0xe0] sm:$0xff]  ;;  %v559_v16 = vld [vmem:[#allocation2 + $0xd8] sm:$0xff]  ;;  %s2765_s21 = smul.u32 56, %s3767_s20  ;;  %s3054_s29 = smov [#allocation10]  }
  0x55   : > { %2311 = vmatprep.subr.mxu1 %v594_v5  ;;  %2268 = vmatpush3.msra.mxu0 %v546_v6  ;;  %v592_v13 = vld [vmem:[#allocation2 + $0x1e0] sm:$0xff]  ;;  %v591_v17 = vld [vmem:[#allocation2 + $0x1d8] sm:$0xff]  ;;  %v558_v20 = vld [vmem:[#allocation2 + $0xd0] sm:$0xff]  ;;  %s2976_s19 = sshll.u32 %s3054_s29, 4  ;;  %s2977_s19 = int_to_ptr.vmem [resolvable:$false] %s2976_s19 }
  0x56   : > { %2312 = vmatpush3.msra.mxu1 %v578_v7  ;;  %2269 = vmatprep.subr.mxu0 %v561_v8  ;;  %v544_v14 = vld [vmem:[#allocation2 + $0x60] sm:$0xff]  ;;  %v543_v18 = vld [vmem:[#allocation2 + $0x58] sm:$0xff]  ;;  %v590_v21 = vld [vmem:[#allocation2 + $0x1d0] sm:$0xff]  ;;  %s3265_s14 = scalar_lea.vmem %s3733_s0, %s2765_s21  ;;  %s3686_s21 = scalar_lea.hbm %s3746_s13, %s2264_s16 }
  0x57   : > { %2313 = vmatprep.subr.mxu1 %v593_v9  ;;  %v576_v15 = vld [vmem:[#allocation2 + $0x160] sm:$0xff]  ;;  %2270 = vmatpush3.msra.mxu0 %v545_v10  ;;  %v575_v19 = vld [vmem:[#allocation2 + $0x158] sm:$0xff]  ;;  %v542_v22 = vld [vmem:[#allocation2 + $0x50] sm:$0xff]  ;;  %s2978_s22 = scalar_lea.vmem %s2977_s19, 1024 }
  0x58   : > { %2314 = vmatpush3.msra.mxu1 %v577_v11  ;;  %2271 = vmatprep.subr.mxu0 %v560_v12  ;;  %v574_v23 = vld [vmem:[#allocation2 + $0x150] sm:$0xff]  ;;  %v557_v24 = vld [vmem:[#allocation2 + $0xc8] sm:$0xff]  ;;  %v556_v28 = vld [vmem:[#allocation2 + $0xc0] sm:$0xff] }
  0x59   : > { %2315 = vmatprep.subr.mxu1 %v592_v13  ;;  %2272 = vmatpush3.msra.mxu0 %v544_v14  ;;  %v589_v25 = vld [vmem:[#allocation2 + $0x1c8] sm:$0xff]  ;;  %v588_v29 = vld [vmem:[#allocation2 + $0x1c0] sm:$0xff]  ;;  %v555_v32 = vld [vmem:[#allocation2 + $0xb8] sm:$0xff] }
  0x5a   : > { %2316 = vmatpush3.msra.mxu1 %v576_v15  ;;  %2273 = vmatprep.subr.mxu0 %v559_v16  ;;  %v541_v26 = vld [vmem:[#allocation2 + $0x48] sm:$0xff]  ;;  %v540_v30 = vld [vmem:[#allocation2 + $0x40] sm:$0xff]  ;;  %v587_v33 = vld [vmem:[#allocation2 + $0x1b8] sm:$0xff] }
  0x5b   : > { %2317 = vmatprep.subr.mxu1 %v591_v17  ;;  %2274 = vmatpush3.msra.mxu0 %v543_v18  ;;  %v573_v27 = vld [vmem:[#allocation2 + $0x148] sm:$0xff]  ;;  %v572_v31 = vld [vmem:[#allocation2 + $0x140] sm:$0xff]  ;;  %v539_v34 = vld [vmem:[#allocation2 + $0x38] sm:$0xff] }
  0x5c   : > { %2318 = vmatpush3.msra.mxu1 %v575_v19  ;;  %2275 = vmatprep.subr.mxu0 %v558_v20  ;;  %v571_v35 = vld [vmem:[#allocation2 + $0x138] sm:$0xff]  ;;  %v554_v36 = vld [vmem:[#allocation2 + $0xb0] sm:$0xff]  ;;  %v553_v40 = vld [vmem:[#allocation2 + $0xa8] sm:$0xff] }
  0x5d   : > { %2319 = vmatprep.subr.mxu1 %v590_v21  ;;  %2276 = vmatpush3.msra.mxu0 %v542_v22  ;;  %v586_v37 = vld [vmem:[#allocation2 + $0x1b0] sm:$0xff]  ;;  %v585_v41 = vld [vmem:[#allocation2 + $0x1a8] sm:$0xff]  ;;  %v552_v44 = vld [vmem:[#allocation2 + $0xa0] sm:$0xff] }
  0x5e   : > { %2320 = vmatpush3.msra.mxu1 %v574_v23  ;;  %2277 = vmatprep.subr.mxu0 %v557_v24  ;;  %v538_v38 = vld [vmem:[#allocation2 + $0x30] sm:$0xff]  ;;  %v537_v42 = vld [vmem:[#allocation2 + $0x28] sm:$0xff]  ;;  %v584_v45 = vld [vmem:[#allocation2 + $0x1a0] sm:$0xff] }
  0x5f   : > { %2321 = vmatprep.subr.mxu1 %v589_v25  ;;  %2278 = vmatpush3.msra.mxu0 %v541_v26  ;;  %v570_v39 = vld [vmem:[#allocation2 + $0x130] sm:$0xff]  ;;  %v569_v43 = vld [vmem:[#allocation2 + $0x128] sm:$0xff]  ;;  %v536_v46 = vld [vmem:[#allocation2 + $0x20] sm:$0xff] }
  0x60   : > { %2322 = vmatpush3.msra.mxu1 %v573_v27  ;;  %2279 = vmatprep.subr.mxu0 %v556_v28  ;;  %v568_v47 = vld [vmem:[#allocation2 + $0x120] sm:$0xff]  ;;  %v551_v48 = vld [vmem:[#allocation2 + $0x98] sm:$0xff]  ;;  %v550_v52 = vld [vmem:[#allocation2 + $0x90] sm:$0xff] }
  0x61   : > { %2323 = vmatprep.subr.mxu1 %v588_v29  ;;  %2280 = vmatpush3.msra.mxu0 %v540_v30  ;;  %v583_v49 = vld [vmem:[#allocation2 + $0x198] sm:$0xff]  ;;  %v582_v53 = vld [vmem:[#allocation2 + $0x190] sm:$0xff]  ;;  %v549_v56 = vld [vmem:[#allocation2 + $0x88] sm:$0xff] }
  0x62   : > { %2324 = vmatpush3.msra.mxu1 %v572_v31  ;;  %2281 = vmatprep.subr.mxu0 %v555_v32  ;;  %v535_v50 = vld [vmem:[#allocation2 + $0x18] sm:$0xff]  ;;  %v534_v54 = vld [vmem:[#allocation2 + $0x10] sm:$0xff]  ;;  %v581_v57 = vld [vmem:[#allocation2 + $0x188] sm:$0xff] }
  0x63   : > { %2325 = vmatprep.subr.mxu1 %v587_v33  ;;  %2282 = vmatpush3.msra.mxu0 %v539_v34  ;;  %v567_v51 = vld [vmem:[#allocation2 + $0x118] sm:$0xff]  ;;  %v566_v55 = vld [vmem:[#allocation2 + $0x110] sm:$0xff]  ;;  %v533_v58 = vld [vmem:[#allocation2 + $0x8] sm:$0xff] }
  0x64   : > { %2326 = vmatpush3.msra.mxu1 %v571_v35  ;;  %2283 = vmatprep.subr.mxu0 %v554_v36  ;;  %v565_v59 = vld [vmem:[#allocation2 + $0x108] sm:$0xff]  ;;  %v548_v60 = vld [vmem:[#allocation2 + $0x80] sm:$0xff]  ;;  %v3271_v1 = vld [vmem:[%s3265_s14 + $0x18] sm:$0xff] }
  0x65   : > { %2327 = vmatprep.subr.mxu1 %v586_v37  ;;  %2284 = vmatpush3.msra.mxu0 %v538_v38  ;;  %v580_v61 = vld [vmem:[#allocation2 + $0x180] sm:$0xff]  ;;  %v3268_v63 = vld [vmem:[%s3265_s14 + $0x8] sm:$0xff]  ;;  %v3277_v3 = vld [vmem:[%s3265_s14 + $0x10] sm:$0xff] }
  0x66   : > { %2328 = vmatpush3.msra.mxu1 %v570_v39  ;;  %2285 = vmatprep.subr.mxu0 %v553_v40  ;;  %v532_v62 = vld [vmem:[#allocation2] sm:$0xff]  ;;  %v627_v4 = vld [vmem:[#allocation2 + $0x2f8] sm:$0xff]  ;;  %v3281_v5 = vld [vmem:[%s3265_s14 + $0x50] sm:$0xff] }
  0x67   : > { %2329 = vmatprep.subr.mxu1 %v585_v41  ;;  %2286 = vmatpush3.msra.mxu0 %v537_v42  ;;  %v564_v0 = vld [vmem:[#allocation2 + $0x100] sm:$0xff]  ;;  %v611_v6 = vld [vmem:[#allocation2 + $0x278] sm:$0xff]  ;;  %v629_v7 = vld [vmem:[#allocation2 + $0x308] sm:$0xff] }
  0x68   : > { %2330 = vmatpush3.msra.mxu1 %v569_v43  ;;  %2287 = vmatprep.subr.mxu0 %v552_v44  ;;  %v3274_v2 = vld [vmem:[%s3265_s14] sm:$0xff]  ;;  %v626_v8 = vld [vmem:[#allocation2 + $0x2f0] sm:$0xff]  ;;  %v3288_v10 = vld [vmem:[%s3265_s14 + $0x48] sm:$0xff] }
  0x69   : > { %2331 = vmatprep.subr.mxu1 %v584_v45  ;;  %2288 = vmatpush3.msra.mxu0 %v536_v46  ;;  %v610_v9 = vld [vmem:[#allocation2 + $0x270] sm:$0xff]  ;;  %v625_v11 = vld [vmem:[#allocation2 + $0x2e8] sm:$0xff]  ;;  %v628_v14 = vld [vmem:[#allocation2 + $0x300] sm:$0xff] }
  0x6a   : > { %2332 = vmatpush3.msra.mxu1 %v568_v47  ;;  %2289 = vmatprep.subr.mxu0 %v551_v48  ;;  %v3291_v12 = vld [vmem:[%s3265_s14 + $0x88] sm:$0xff]  ;;  %v624_v15 = vld [vmem:[#allocation2 + $0x2e0] sm:$0xff]  ;;  %v623_v18 = vld [vmem:[#allocation2 + $0x2d8] sm:$0xff] }
  0x6b   : > { %2333 = vmatprep.subr.mxu1 %v583_v49  ;;  %2290 = vmatpush3.msra.mxu0 %v535_v50  ;;  %v609_v13 = vld [vmem:[#allocation2 + $0x268] sm:$0xff]  ;;  %v608_v16 = vld [vmem:[#allocation2 + $0x260] sm:$0xff]  ;;  %v607_v20 = vld [vmem:[#allocation2 + $0x258] sm:$0xff] }
  0x6c   : > { %2334 = vmatpush3.msra.mxu1 %v567_v51  ;;  %2291 = vmatprep.subr.mxu0 %v550_v52  ;;  %v3296_v17 = vld [vmem:[%s3265_s14 + $0x80] sm:$0xff]  ;;  %v1049_v21 = vld [vmem:[#allocation5 + $0xf8] sm:$0xff]  ;;  %v622_v22 = vld [vmem:[#allocation2 + $0x2d0] sm:$0xff] }
  0x6d   : > { %2335 = vmatprep.subr.mxu1 %v582_v53  ;;  %2292 = vmatpush3.msra.mxu0 %v534_v54  ;;  %v3299_v19 = vld [vmem:[%s3265_s14 + $0xc0] sm:$0xff]  ;;  %v606_v24 = vld [vmem:[#allocation2 + $0x250] sm:$0xff]  ;;  %v3307_v25 = vld [vmem:[%s3265_s14 + $0xb8] sm:$0xff] }
  0x6e   : > { %2336 = vmatpush3.msra.mxu1 %v566_v55  ;;  %2293 = vmatprep.subr.mxu0 %v549_v56  ;;  %v3303_v23 = vld [vmem:[%s3265_s14 + $0x40] sm:$0xff]  ;;  %v621_v26 = vld [vmem:[#allocation2 + $0x2c8] sm:$0xff]  ;;  %v3310_v27 = vld [vmem:[%s3265_s14 + $0x30] sm:$0xff] }
  0x6f   : > { %2337 = vmatprep.subr.mxu1 %v581_v57  ;;  %2294 = vmatpush3.msra.mxu0 %v533_v58  ;;  %v605_v28 = vld [vmem:[#allocation2 + $0x248] sm:$0xff]  ;;  %v620_v29 = vld [vmem:[#allocation2 + $0x2c0] sm:$0xff]  ;;  %v3315_v30 = vld [vmem:[%s3265_s14 + $0x38] sm:$0xff] }
  0x70   : > { %2338 = vmatpush3.msra.mxu1 %v565_v59  ;;  %2295 = vmatprep.subr.mxu0 %v548_v60  ;;  %v604_v31 = vld [vmem:[#allocation2 + $0x240] sm:$0xff]  ;;  %v3320_v32 = vld [vmem:[%s3265_s14 + $0x68] sm:$0xff]  ;;  %v619_v33 = vld [vmem:[#allocation2 + $0x2b8] sm:$0xff] }
  0x71   : > { %2339 = vmatprep.subr.mxu1 %v580_v61  ;;  %2296 = vmatpush3.msra.mxu0 %v532_v62  ;;  %v1033_v34 = vld [vmem:[#allocation5 + $0x78] sm:$0xff]  ;;  %v603_v35 = vld [vmem:[#allocation2 + $0x238] sm:$0xff]  ;;  %v1048_v36 = vld [vmem:[#allocation5 + $0xf0] sm:$0xff] }
  0x72   : > { %714 = vmatprep.mubr.f32.mxu0 %v3268_v63  ;;  %2340 = vmatpush3.msra.mxu1 %v564_v0  ;;  %v618_v37 = vld [vmem:[#allocation2 + $0x2b0] sm:$0xff]  ;;  %v1032_v38 = vld [vmem:[#allocation5 + $0x70] sm:$0xff]  ;;  %v1047_v40 = vld [vmem:[#allocation5 + $0xe8] sm:$0xff] }
  0x73   : > { %799 = vmatprep.mubr.f32.mxu1 %v3271_v1  ;;  %715 = vmatmul.mubr.f32.vlgmr.msra.gmra.mxu0 %v3274_v2  ;;  %v602_v39 = vld [vmem:[#allocation2 + $0x230] sm:$0xff]  ;;  %v617_v41 = vld [vmem:[#allocation2 + $0x2a8] sm:$0xff]  ;;  %v1031_v42 = vld [vmem:[#allocation5 + $0x68] sm:$0xff] }
  0x74   : > { %800 = vmatmul.mubr.f32.vlgmr.msra.gmra.mxu1 %v3277_v3  ;;  %2353 = vmatprep.subr.mxu0 %v627_v4  ;;  %v3326_v43 = vld [vmem:[%s3265_s14 + $0x78] sm:$0xff]  ;;  %v601_v44 = vld [vmem:[#allocation2 + $0x228] sm:$0xff]  ;;  %v1046_v45 = vld [vmem:[#allocation5 + $0xe0] sm:$0xff] }
  0x75   : > { %804 = vmatprep.mubr.f32.mxu1 %v3281_v5  ;;  %2354 = vmatpush3.msra.mxu0 %v611_v6  ;;  %v3329_v46 = vld [vmem:[%s3265_s14 + $0x70] sm:$0xff]  ;;  %v616_v47 = vld [vmem:[#allocation2 + $0x2a0] sm:$0xff]  ;;  %v1045_v50 = vld [vmem:[#allocation5 + $0xd8] sm:$0xff] }
  0x76   : > { %2669 = vmatprep.subr.mxu1 %v629_v7  ;;  %2355 = vmatprep.subr.mxu0 %v626_v8  ;;  %v1030_v48 = vld [vmem:[#allocation5 + $0x60] sm:$0xff]  ;;  %v600_v49 = vld [vmem:[#allocation2 + $0x220] sm:$0xff]  ;;  %v615_v51 = vld [vmem:[#allocation2 + $0x298] sm:$0xff] }
  0x77   : > { %2670 = vmatpush3.msra.mxu1 %v629_v7  ;;  %2356 = vmatpush3.msra.mxu0 %v610_v9  ;;  %v1029_v52 = vld [vmem:[#allocation5 + $0x58] sm:$0xff]  ;;  %v3334_v53 = vld [vmem:[%s3265_s14 + $0xb0] sm:$0xff]  ;;  %v599_v54 = vld [vmem:[#allocation2 + $0x218] sm:$0xff] }
  0x78   : > { %805 = vmatmul.mubr.f32.gmra.mxu1 %v3288_v10  ;;  %2357 = vmatprep.subr.mxu0 %v625_v11  ;;  %v1044_v55 = vld [vmem:[#allocation5 + $0xd0] sm:$0xff]  ;;  %v3337_v56 = vld [vmem:[%s3265_s14 + $0xa8] sm:$0xff]  ;;  %v614_v57 = vld [vmem:[#allocation2 + $0x290] sm:$0xff] }
  0x79   : > { %809 = vmatprep.mubr.f32.mxu1 %v3291_v12  ;;  %2358 = vmatpush3.msra.mxu0 %v609_v13  ;;  %v1028_v58 = vld [vmem:[#allocation5 + $0x50] sm:$0xff]  ;;  %v598_v59 = vld [vmem:[#allocation2 + $0x210] sm:$0xff]  ;;  %v1043_v60 = vld [vmem:[#allocation5 + $0xc8] sm:$0xff] }
  0x7a   : > { %2671 = vmatprep.subr.mxu1 %v628_v14  ;;  %2359 = vmatprep.subr.mxu0 %v624_v15  ;;  %v613_v61 = vld [vmem:[#allocation2 + $0x288] sm:$0xff]  ;;  %v1027_v62 = vld [vmem:[#allocation5 + $0x48] sm:$0xff]  ;;  %v1042_v4 = vld [vmem:[#allocation5 + $0xc0] sm:$0xff] }
  0x7b   : > { %2672 = vmatpush3.msra.mxu1 %v628_v14  ;;  %2360 = vmatpush3.msra.mxu0 %v608_v16  ;;  %v597_v0 = vld [vmem:[#allocation2 + $0x208] sm:$0xff]  ;;  %v612_v6 = vld [vmem:[#allocation2 + $0x280] sm:$0xff]  ;;  %v1026_v7 = vld [vmem:[#allocation5 + $0x40] sm:$0xff] }
  0x7c   : > { %810 = vmatmul.mubr.f32.gmra.mxu1 %v3296_v17  ;;  %2361 = vmatprep.subr.mxu0 %v623_v18  ;;  %v596_v8 = vld [vmem:[#allocation2 + $0x200] sm:$0xff]  ;;  %v3342_v9 = vld [vmem:[%s3265_s14 + $0x28] sm:$0xff] }
  0x7d   : > { %814 = vmatprep.mubr.f32.mxu1 %v3299_v19  ;;  %2362 = vmatpush3.msra.mxu0 %v607_v20  ;;  %v1041_v11 = vld [vmem:[#allocation5 + $0xb8] sm:$0xff]  ;;  %v3345_v13 = vld [vmem:[%s3265_s14 + $0x20] sm:$0xff] }
  0x7e   : > { %2403 = vmatprep.subr.mxu1 %v1049_v21  ;;  %2363 = vmatprep.subr.mxu0 %v622_v22  ;;  %v1025_v14 = vld [vmem:[#allocation5 + $0x38] sm:$0xff]  ;;  %v3348_v15 = vld [vmem:[%s3265_s14 + $0x60] sm:$0xff]  ;;  %v1039_v22 = vld [vmem:[#allocation5 + $0xa8] sm:$0xff] }
  0x7f   : > { %719 = vmatprep.mubr.f32.mxu0 %v3303_v23  ;;  %2364 = vmatpush3.msra.mxu0 %v606_v24  ;;  %v1040_v16 = vld [vmem:[#allocation5 + $0xb0] sm:$0xff]  ;;  %v1081_v18 = vld [vmem:[#allocation5 + $0x1f8] sm:$0xff]  ;;  %v3354_v24 = vld [vmem:[%s3265_s14 + $0x58] sm:$0xff] }
  0x80   : > { %815 = vmatmul.mubr.f32.gmra.mxu1 %v3307_v25  ;;  %2365 = vmatprep.subr.mxu0 %v621_v26  ;;  %v1024_v20 = vld [vmem:[#allocation5 + $0x30] sm:$0xff]  ;;  %v1065_v21 = vld [vmem:[#allocation5 + $0x178] sm:$0xff]  ;;  %v1023_v26 = vld [vmem:[#allocation5 + $0x28] sm:$0xff] }
  0x81   : > { %2673 = vmatprep.mubr.msk.f32.mxu1 %vm637_vm0, %v3310_v27  ;;  %2366 = vmatpush3.msra.mxu0 %v605_v28  ;;  %v1080_v28 = vld [vmem:[#allocation5 + $0x1f0] sm:$0xff] }
  0x82   : > { %2367 = vmatprep.subr.mxu0 %v620_v29  ;;  %720 = vmatmul.mubr.f32.gmra.mxu0 %v3315_v30  ;;  %v1038_v29 = vld [vmem:[#allocation5 + $0xa0] sm:$0xff] }
  0x83   : > { %2368 = vmatpush3.msra.mxu0 %v604_v31  ;;  %724 = vmatprep.mubr.f32.mxu0 %v3326_v43  ;;  %v1064_v31 = vld [vmem:[#allocation5 + $0x170] sm:$0xff] }
  0x84   : > { %2674 = vmatmul.mubr.msk.f32.vlgmr.msra.gmra.mxu1 %vm637_vm0, %v3320_v32  ;;  %2369 = vmatprep.subr.mxu0 %v619_v33  ;;  %v1022_v33 = vld [vmem:[#allocation5 + $0x20] sm:$0xff] }
  0x85   : > { %2404 = vmatpush3.msra.mxu1 %v1033_v34  ;;  %2370 = vmatpush3.msra.mxu0 %v603_v35  ;;  %v3358_v34 = vld [vmem:[%s3265_s14 + $0x98] sm:$0xff]  ;;  %v1037_v35 = vld [vmem:[#allocation5 + $0x98] sm:$0xff] }
  0x86   : > { %2405 = vmatprep.subr.mxu1 %v1048_v36  ;;  %2371 = vmatprep.subr.mxu0 %v618_v37  ;;  %v1079_v36 = vld [vmem:[#allocation5 + $0x1e8] sm:$0xff]  ;;  %v3361_v37 = vld [vmem:[%s3265_s14 + $0x90] sm:$0xff] }
  0x87   : > { %2406 = vmatpush3.msra.mxu1 %v1032_v38  ;;  %2372 = vmatpush3.msra.mxu0 %v602_v39  ;;  %v1021_v38 = vld [vmem:[#allocation5 + $0x18] sm:$0xff]  ;;  %v1063_v39 = vld [vmem:[#allocation5 + $0x168] sm:$0xff] }
  0x88   : > { %2407 = vmatprep.subr.mxu1 %v1047_v40  ;;  %2373 = vmatprep.subr.mxu0 %v617_v41  ;;  %v1036_v40 = vld [vmem:[#allocation5 + $0x90] sm:$0xff]  ;;  %v1078_v41 = vld [vmem:[#allocation5 + $0x1e0] sm:$0xff] }
  0x89   : > { %2408 = vmatpush3.msra.mxu1 %v1031_v42  ;;  %2374 = vmatpush3.msra.mxu0 %v601_v44  ;;  %v1020_v42 = vld [vmem:[#allocation5 + $0x10] sm:$0xff]  ;;  %v1062_v44 = vld [vmem:[#allocation5 + $0x160] sm:$0xff] }
  0x8a   : > { %2409 = vmatprep.subr.mxu1 %v1046_v45  ;;  %725 = vmatmul.mubr.f32.gmra.mxu0 %v3329_v46  ;;  %v3366_v45 = vld [vmem:[%s3265_s14 + $0xd0] sm:$0xff] }
  0x8b   : > { %2375 = vmatprep.subr.mxu0 %v616_v47  ;;  %2410 = vmatpush3.msra.mxu1 %v1030_v48  ;;  %v3369_v47 = vld [vmem:[%s3265_s14 + $0xa0] sm:$0xff]  ;;  %v1035_v48 = vld [vmem:[#allocation5 + $0x88] sm:$0xff] }
  0x8c   : > { %2376 = vmatpush3.msra.mxu0 %v600_v49  ;;  %2411 = vmatprep.subr.mxu1 %v1045_v50  ;;  %v1077_v49 = vld [vmem:[#allocation5 + $0x1d8] sm:$0xff] }
  0x8d   : > { %2377 = vmatprep.subr.mxu0 %v615_v51  ;;  %2412 = vmatpush3.msra.mxu1 %v1029_v52  ;;  %v3372_v50 = vld [vmem:[%s3265_s14 + $0xc8] sm:$0xff]  ;;  %v3376_v51 = vld [vmem:[%s3265_s14 + $0xd8] sm:$0xff]  ;;  %s2234_s14 = sshll.u32 %s493_s27, 5 }
  0x8e   : > { %729 = vmatprep.mubr.f32.mxu0 %v3334_v53  ;;  %2378 = vmatpush3.msra.mxu0 %v599_v54  ;;  %v1061_v52 = vld [vmem:[#allocation5 + $0x158] sm:$0xff]  ;;  %v1019_v54 = vld [vmem:[#allocation5 + $0x8] sm:$0xff]  ;;  %s3664_s30 = scalar_lea.vmem [#allocation10], %s2234_s14 }
  0x8f   : > { %2413 = vmatprep.subr.mxu1 %v1044_v55  ;;  %730 = vmatmul.mubr.f32.gmra.mxu0 %v3337_v56  ;;  %v1076_v55 = vld [vmem:[#allocation5 + $0x1d0] sm:$0xff]  ;;  %s2119_s17 = sshll.u32 %s3664_s30, 4  ;;  %s3688_s17 = int_to_ptr.vmem [resolvable:$true] %s2119_s17 }
  0x90   : > { %2379 = vmatprep.subr.mxu0 %v614_v57  ;;  %2414 = vmatpush3.msra.mxu1 %v1028_v58  ;;  %v991_v57 = vmul.f32 %v3268_v63, %v3268_v63  ;;  %v1034_v58 = vld [vmem:[#allocation5 + $0x80] sm:$0xff]  ;;  %v1059_v63 = vld [vmem:[#allocation5 + $0x148] sm:$0xff]  ;;  %s2972_s14 = scalar_lea.vmem %s3688_s17, 512  ;;  %p2979_p4 = scmp.lt.s32.totalorder %s3688_s17, %s2977_s19 }
  0x91   : > { %2380 = vmatpush3.msra.mxu0 %v598_v59  ;;  %2415 = vmatprep.subr.mxu1 %v1043_v60  ;;  %v1060_v59 = vld [vmem:[#allocation5 + $0x150] sm:$0xff]  ;;  %v1018_v60 = vld [vmem:[#allocation5] sm:$0xff]  ;;  %p2973_p10 = scmp.ne.s32.totalorder %s3688_s17, %s2972_s14  ;;  %p2980_p7 = scmp.lt.s32.totalorder %s2978_s22, %s2972_s14 }
  0x92   : > { %2381 = vmatprep.subr.mxu0 %v613_v61  ;;  %2416 = vmatpush3.msra.mxu1 %v1027_v62  ;;  %v990_v61 = vmul.f32 %v3274_v2, %v3274_v2  ;;  %v1075_v62 = vld [vmem:[#allocation5 + $0x1c8] sm:$0xff] }
  0x93   : > { %2382 = vmatpush3.msra.mxu0 %v597_v0  ;;  %2417 = vmatprep.subr.mxu1 %v1042_v4  ;;  %v1113_v0 = vld [vmem:[#allocation5 + $0x2f8] sm:$0xff]  ;;  %v1111_v2 = vld [vmem:[#allocation5 + $0x2e8] sm:$0xff]  ;;  %p2974_p12 = pnand %p2973_p10, %p3165_p5  ;;  %p2981_p8 = por %p2980_p7, %p2979_p4 }
  0x94   : > { %2383 = vmatprep.subr.mxu0 %v612_v6  ;;  %2418 = vmatpush3.msra.mxu1 %v1026_v7  ;;  %v1097_v4 = vld [vmem:[#allocation5 + $0x278] sm:$0xff]  ;;  %v1074_v6 = vld [vmem:[#allocation5 + $0x1c0] sm:$0xff]  ;;  %v1112_v7 = vld [vmem:[#allocation5 + $0x2f0] sm:$0xff] }
  0x95   : > { %2384 = vmatpush3.msra.mxu0 %v596_v8  ;;  %884 = vmatprep.mubr.f32.mxu0 %v3342_v9  ;;  %v1058_v8 = vld [vmem:[#allocation5 + $0x140] sm:$0xff]  ;;  %p2975_p13 = pneg %p2974_p12 }
  0x96   : > { %2419 = vmatprep.subr.mxu1 %v1041_v11  ;;  %885 = vmatmul.mubr.f32.vlgmr.msra.gmra.mxu0 %v3345_v13  ;;  %v1096_v11 = vld [vmem:[#allocation5 + $0x270] sm:$0xff] }
  0x97   : > { %2420 = vmatpush3.msra.mxu1 %v1025_v14  ;;  %889 = vmatprep.mubr.f32.mxu0 %v3348_v15  ;;  %v1073_v14 = vld [vmem:[#allocation5 + $0x1b8] sm:$0xff]  ;;  %p2982_p11 = pnand %p2981_p8, %p2975_p13 }
  0x98   : > { %2421 = vmatprep.subr.mxu1 %v1040_v16  ;;  %2447 = vmatprep.subr.mxu0 %v1081_v18  ;;  %v1057_v16 = vld [vmem:[#allocation5 + $0x138] sm:$0xff]  ;;  %v1095_v18 = vld [vmem:[#allocation5 + $0x268] sm:$0xff] }
  0x99   : > { %2422 = vmatpush3.msra.mxu1 %v1024_v20  ;;  %2448 = vmatpush3.msra.mxu0 %v1065_v21  ;;  %v1072_v20 = vld [vmem:[#allocation5 + $0x1b0] sm:$0xff]  ;;  %v1110_v21 = vld [vmem:[#allocation5 + $0x2e0] sm:$0xff] }
  0x9a   : > { %2423 = vmatprep.subr.mxu1 %v1039_v22  ;;  %890 = vmatmul.mubr.f32.gmra.mxu0 %v3354_v24  ;;  %v1056_v22 = vld [vmem:[#allocation5 + $0x130] sm:$0xff] }
  0x9b   : > { %2424 = vmatpush3.msra.mxu1 %v1023_v26  ;;  %2449 = vmatprep.subr.mxu0 %v1080_v28  ;;  %v1094_v26 = vld [vmem:[#allocation5 + $0x260] sm:$0xff]  ;;  %v1071_v28 = vld [vmem:[#allocation5 + $0x1a8] sm:$0xff] }
  0x9c   : > { %2425 = vmatprep.subr.mxu1 %v1038_v29  ;;  %2450 = vmatpush3.msra.mxu0 %v1064_v31  ;;  %v1109_v29 = vld [vmem:[#allocation5 + $0x2d8] sm:$0xff]  ;;  %v1055_v31 = vld [vmem:[#allocation5 + $0x128] sm:$0xff] }
  0x9d   : > { %2426 = vmatpush3.msra.mxu1 %v1022_v33  ;;  %894 = vmatprep.mubr.f32.mxu0 %v3358_v34  ;;  %v1093_v33 = vld [vmem:[#allocation5 + $0x258] sm:$0xff] }
  0x9e   : > { %2427 = vmatprep.subr.mxu1 %v1037_v35  ;;  %2451 = vmatprep.subr.mxu0 %v1079_v36  ;;  %v1070_v35 = vld [vmem:[#allocation5 + $0x1a0] sm:$0xff]  ;;  %v1108_v36 = vld [vmem:[#allocation5 + $0x2d0] sm:$0xff] }
  0x9f   : > { %895 = vmatmul.mubr.f32.gmra.mxu0 %v3361_v37  ;;  %2428 = vmatpush3.msra.mxu1 %v1021_v38  ;;  %v1054_v38 = vld [vmem:[#allocation5 + $0x120] sm:$0xff] }
  0xa0   : > { %2452 = vmatpush3.msra.mxu0 %v1063_v39  ;;  %2429 = vmatprep.subr.mxu1 %v1036_v40  ;;  %v1092_v39 = vld [vmem:[#allocation5 + $0x250] sm:$0xff]  ;;  %v1069_v40 = vld [vmem:[#allocation5 + $0x198] sm:$0xff] }
  0xa1   : > { %2453 = vmatprep.subr.mxu0 %v1078_v41  ;;  %2430 = vmatpush3.msra.mxu1 %v1020_v42  ;;  %v1107_v41 = vld [vmem:[#allocation5 + $0x2c8] sm:$0xff]  ;;  %v1053_v42 = vld [vmem:[#allocation5 + $0x118] sm:$0xff] }
  0xa2   : > { %2454 = vmatpush3.msra.mxu0 %v1062_v44  ;;  %899 = vmatprep.mubr.f32.mxu0 %v3366_v45  ;;  %v1091_v44 = vld [vmem:[#allocation5 + $0x248] sm:$0xff] }
  0xa3   : > { %2676 = vmatprep.mubr.msk.f32.mxu1 %vm637_vm0, %v3369_v47  ;;  %2431 = vmatprep.subr.mxu1 %v1035_v48  ;;  %v1068_v48 = vld [vmem:[#allocation5 + $0x190] sm:$0xff] }
  0xa4   : > { %2455 = vmatprep.subr.mxu0 %v1077_v49  ;;  %900 = vmatmul.mubr.f32.gmra.mxu0 %v3372_v50  ;;  %v1106_v49 = vld [vmem:[#allocation5 + $0x2c0] sm:$0xff] }
  0xa5   : > { %2677 = vmatmul.mubr.msk.f32.gmra.mxu1 %vm637_vm0, %v3376_v51  ;;  %2456 = vmatpush3.msra.mxu0 %v1061_v52  ;;  %v1052_v52 = vld [vmem:[#allocation5 + $0x110] sm:$0xff] }
  0xa6   : > { %2432 = vmatpush3.msra.mxu1 %v1019_v54  ;;  %2457 = vmatprep.subr.mxu0 %v1076_v55  ;;  %v1090_v54 = vld [vmem:[#allocation5 + $0x240] sm:$0xff]  ;;  %v1067_v55 = vld [vmem:[#allocation5 + $0x188] sm:$0xff] }
  0xa7   : > { %2433 = vmatprep.subr.mxu1 %v1034_v58  ;;  %2458 = vmatpush3.msra.mxu0 %v1060_v59  ;;  %v1051_v58 = vld [vmem:[#allocation5 + $0x108] sm:$0xff]  ;;  %v998_v59 = vmul.f32 %v3303_v23, %v3303_v23  ;;  %v1088_v23 = vld [vmem:[#allocation5 + $0x230] sm:$0xff] }
  0xa8   : > { %2434 = vmatpush3.msra.mxu1 %v1018_v60  ;;  %1199 = vmatprep.mubr.f32.mxu1 %v991_v57  ;;  %v1105_v57 = vld [vmem:[#allocation5 + $0x2b8] sm:$0xff] }
  0xa9   : > { %2459 = vmatprep.subr.mxu0 %v1075_v62  ;;  %2491 = vmatprep.subr.mxu1 %v1113_v0  ;;  %v1089_v60 = vld [vmem:[#allocation5 + $0x238] sm:$0xff]  ;;  %v993_v62 = vmul.f32 %v3271_v1, %v3271_v1  ;;  %v1104_v0 = vld [vmem:[#allocation5 + $0x2b0] sm:$0xff]  ;;  %v1103_v1 = vld [vmem:[#allocation5 + $0x2a8] sm:$0xff] }
  0xaa   : > { %1200 = vmatmul.mubr.f32.vlgmr.msra.gmra.mxu1 %v990_v61  ;;  %2460 = vmatpush3.msra.mxu0 %v1059_v63  ;;  %v1066_v61 = vld [vmem:[#allocation5 + $0x180] sm:$0xff]  ;;  %v992_v63 = vmul.f32 %v3277_v3, %v3277_v3  ;;  %v1087_v3 = vld [vmem:[#allocation5 + $0x228] sm:$0xff] }
  0xab   : > { %2492 = vmatpush3.msra.mxu1 %v1097_v4  ;;  %2461 = vmatprep.subr.mxu0 %v1074_v6  ;;  %v1050_v4 = vld [vmem:[#allocation5 + $0x100] sm:$0xff]  ;;  %v997_v6 = vmul.f32 %v3315_v30, %v3315_v30 }
  0xac   : > { %2493 = vmatprep.subr.mxu1 %v1112_v7  ;;  %2462 = vmatpush3.msra.mxu0 %v1058_v8  ;;  %v1005_v7 = vmul.f32 %v3326_v43, %v3326_v43  ;;  %v1000_v8 = vmul.f32 %v3281_v5, %v3281_v5  ;;  %v1102_v30 = vld [vmem:[#allocation5 + $0x2a0] sm:$0xff]  ;;  %v1101_v5 = vld [vmem:[#allocation5 + $0x298] sm:$0xff] }
  0xad   : > { %2494 = vmatpush3.msra.mxu1 %v1096_v11  ;;  %2463 = vmatprep.subr.mxu0 %v1073_v14  ;;  %v999_v11 = vmul.f32 %v3288_v10, %v3288_v10  ;;  %v1004_v14 = vmul.f32 %v3329_v46, %v3329_v46  ;;  %v1086_v43 = vld [vmem:[#allocation5 + $0x220] sm:$0xff]  ;;  %v1085_v10 = vld [vmem:[#allocation5 + $0x218] sm:$0xff]  ;;  %v1100_v46 = vld [vmem:[#allocation5 + $0x290] sm:$0xff] }
  0xae   : > { %2495 = vmatprep.subr.mxu1 %v1111_v2  ;;  %2464 = vmatpush3.msra.mxu0 %v1057_v16  ;;  %v1012_v2 = vmul.f32 %v3334_v53, %v3334_v53  ;;  %v1007_v16 = vmul.f32 %v3291_v12, %v3291_v12  ;;  %v1084_v53 = vld [vmem:[#allocation5 + $0x210] sm:$0xff]  ;;  %v1099_v12 = vld [vmem:[#allocation5 + $0x288] sm:$0xff] }
  0xaf   : > { %2496 = vmatpush3.msra.mxu1 %v1095_v18  ;;  %2465 = vmatprep.subr.mxu0 %v1072_v20  ;;  %v1006_v18 = vmul.f32 %v3296_v17, %v3296_v17  ;;  %v1011_v20 = vmul.f32 %v3337_v56, %v3337_v56  ;;  %v1083_v17 = vld [vmem:[#allocation5 + $0x208] sm:$0xff]  ;;  %v1098_v56 = vld [vmem:[#allocation5 + $0x280] sm:$0xff] }
  0xb0   : > { %2497 = vmatprep.subr.mxu1 %v1110_v21  ;;  %2466 = vmatpush3.msra.mxu0 %v1056_v22  ;;  %v1014_v21 = vmul.f32 %v3299_v19, %v3299_v19  ;;  %v995_v22 = vmul.f32 %v3342_v9, %v3342_v9  ;;  %v1082_v19 = vld [vmem:[#allocation5 + $0x200] sm:$0xff]  ;;  %v1115_v9 = vld [vmem:[#allocation5 + $0x308] sm:$0xff] }
  0xb1   : > { %2498 = vmatpush3.msra.mxu1 %v1094_v26  ;;  %2467 = vmatprep.subr.mxu0 %v1071_v28  ;;  %v1013_v26 = vmul.f32 %v3307_v25, %v3307_v25  ;;  %v994_v28 = vmul.f32 %v3345_v13, %v3345_v13  ;;  %v1114_v25 = vld [vmem:[#allocation5 + $0x300] sm:$0xff]  ;;  %v1003_v13 = vmul.f32 %v3320_v32, %v3320_v32 }
  0xb2   : > { %2499 = vmatprep.subr.mxu1 %v1109_v29  ;;  %2468 = vmatpush3.msra.mxu0 %v1055_v31  ;;  %v1002_v29 = vmul.f32 %v3348_v15, %v3348_v15  ;;  %v996_v31 = vmul.f32 %v3310_v27, %v3310_v27  ;;  %v1009_v15 = vmul.f32 %v3358_v34, %v3358_v34  ;;  %v1510_v27 = vld [vmem:[#allocation7 + $0x78] sm:$0xff] }
  0xb3   : > { %2500 = vmatpush3.msra.mxu1 %v1093_v33  ;;  %2469 = vmatprep.subr.mxu0 %v1070_v35  ;;  %v1001_v33 = vmul.f32 %v3354_v24, %v3354_v24  ;;  %v1010_v35 = vmul.f32 %v3369_v47, %v3369_v47  ;;  %v1008_v32 = vmul.f32 %v3361_v37, %v3361_v37  ;;  %v1509_v47 = vld [vmem:[#allocation7 + $0x70] sm:$0xff]  ;;  %v1508_v37 = vld [vmem:[#allocation7 + $0x68] sm:$0xff] }
  0xb4   : > { %2501 = vmatprep.subr.mxu1 %v1108_v36  ;;  %2470 = vmatpush3.msra.mxu0 %v1054_v38  ;;  %v1017_v24 = vmul.f32 %v3376_v51, %v3376_v51  ;;  %v1016_v34 = vmul.f32 %v3366_v45, %v3366_v45  ;;  %v1015_v36 = vmul.f32 %v3372_v50, %v3372_v50  ;;  %v1507_v51 = vld [vmem:[#allocation7 + $0x60] sm:$0xff]  ;;  %v1506_v45 = vld [vmem:[#allocation7 + $0x58] sm:$0xff]  ;;  %v1505_v38 = vld [vmem:[#allocation7 + $0x50] sm:$0xff] }
  0xb5   : > { %2502 = vmatpush3.msra.mxu1 %v1092_v39  ;;  %2471 = vmatprep.subr.mxu0 %v1069_v40  ;;  %v1504_v39 = vld [vmem:[#allocation7 + $0x48] sm:$0xff]  ;;  %v1503_v50 = vld [vmem:[#allocation7 + $0x40] sm:$0xff]  ;;  %v1502_v40 = vld [vmem:[#allocation7 + $0x38] sm:$0xff] }
  0xb6   : > { %2503 = vmatprep.subr.mxu1 %v1107_v41  ;;  %2472 = vmatpush3.msra.mxu0 %v1053_v42  ;;  %v1501_v41 = vld [vmem:[#allocation7 + $0x30] sm:$0xff]  ;;  %v1500_v42 = vld [vmem:[#allocation7 + $0x28] sm:$0xff] }
  0xb7   : > { %2504 = vmatpush3.msra.mxu1 %v1091_v44  ;;  %2473 = vmatprep.subr.mxu0 %v1068_v48  ;;  %v1499_v44 = vld [vmem:[#allocation7 + $0x20] sm:$0xff]  ;;  %v1498_v48 = vld [vmem:[#allocation7 + $0x18] sm:$0xff] }
  0xb8   : > { %2505 = vmatprep.subr.mxu1 %v1106_v49  ;;  %2474 = vmatpush3.msra.mxu0 %v1052_v52  ;;  %v1497_v49 = vld [vmem:[#allocation7 + $0x10] sm:$0xff]  ;;  %v1496_v52 = vld [vmem:[#allocation7 + $0x8] sm:$0xff] }
  0xb9   : > { %2506 = vmatpush3.msra.mxu1 %v1090_v54  ;;  %2475 = vmatprep.subr.mxu0 %v1067_v55  ;;  %v1495_v54 = vld [vmem:[#allocation7] sm:$0xff]  ;;  %v1642_v55 = vld [vmem:[#allocation8 + $0xf8] sm:$0xff] }
  0xba   : > { %2507 = vmatprep.subr.mxu1 %v1105_v57  ;;  %2476 = vmatpush3.msra.mxu0 %v1051_v58  ;;  %v1626_v57 = vld [vmem:[#allocation8 + $0x78] sm:$0xff]  ;;  %v1641_v58 = vld [vmem:[#allocation8 + $0xf0] sm:$0xff] }
  0xbb   : > { %2508 = vmatpush3.msra.mxu1 %v1089_v60  ;;  %2477 = vmatprep.subr.mxu0 %v1066_v61  ;;  %v1640_v60 = vld [vmem:[#allocation8 + $0xe8] sm:$0xff] }
  0xbc   : > { %2509 = vmatprep.subr.mxu1 %v1104_v0  ;;  %1204 = vmatprep.mubr.f32.mxu1 %v998_v59  ;;  %v1625_v59 = vld [vmem:[#allocation8 + $0x70] sm:$0xff]  ;;  %v1624_v61 = vld [vmem:[#allocation8 + $0x68] sm:$0xff]  ;;  %v1623_v0 = vld [vmem:[#allocation8 + $0x60] sm:$0xff] }
  0xbd   : > { %2478 = vmatpush3.msra.mxu0 %v1050_v4  ;;  %1284 = vmatprep.mubr.f32.mxu0 %v993_v62  ;;  %v1639_v62 = vld [vmem:[#allocation8 + $0xe0] sm:$0xff]  ;;  %v1622_v4 = vld [vmem:[#allocation8 + $0x58] sm:$0xff] }
  0xbe   : > { %2510 = vmatpush3.msra.mxu1 %v1088_v23  ;;  %1285 = vmatmul.mubr.f32.vlgmr.msra.gmra.mxu0 %v992_v63  ;;  %v1638_v63 = vld [vmem:[#allocation8 + $0xd8] sm:$0xff]  ;;  %v1621_v23 = vld [vmem:[#allocation8 + $0x50] sm:$0xff] }
  0xbf   : > { %1205 = vmatmul.mubr.f32.gmra.mxu1 %v997_v6  ;;  %2511 = vmatprep.subr.mxu1 %v1103_v1  ;;  %v1637_v6 = vld [vmem:[#allocation8 + $0xd0] sm:$0xff]  ;;  %v1620_v1 = vld [vmem:[#allocation8 + $0x48] sm:$0xff] }
  0xc0   : > { %2512 = vmatpush3.msra.mxu1 %v1087_v3  ;;  %1209 = vmatprep.mubr.f32.mxu1 %v1005_v7  ;;  %v1636_v7 = vld [vmem:[#allocation8 + $0xc8] sm:$0xff]  ;;  %v1619_v3 = vld [vmem:[#allocation8 + $0x40] sm:$0xff] }
  0xc1   : > { %2513 = vmatprep.subr.mxu1 %v1102_v30  ;;  %1289 = vmatprep.mubr.f32.mxu0 %v1000_v8  ;;  %v1635_v8 = vld [vmem:[#allocation8 + $0xc0] sm:$0xff]  ;;  %v1618_v30 = vld [vmem:[#allocation8 + $0x38] sm:$0xff] }
  0xc2   : > { %2514 = vmatpush3.msra.mxu1 %v1086_v43  ;;  %1290 = vmatmul.mubr.f32.gmra.mxu0 %v999_v11  ;;  %v1634_v11 = vld [vmem:[#allocation8 + $0xb8] sm:$0xff]  ;;  %v1617_v43 = vld [vmem:[#allocation8 + $0x30] sm:$0xff] }
  0xc3   : > { %1210 = vmatmul.mubr.f32.gmra.mxu1 %v1004_v14  ;;  %2515 = vmatprep.subr.mxu1 %v1101_v5  ;;  %v1633_v14 = vld [vmem:[#allocation8 + $0xb0] sm:$0xff]  ;;  %v1616_v5 = vld [vmem:[#allocation8 + $0x28] sm:$0xff] }
  0xc4   : > { %2516 = vmatpush3.msra.mxu1 %v1085_v10  ;;  %1214 = vmatprep.mubr.f32.mxu1 %v1012_v2  ;;  %v1632_v2 = vld [vmem:[#allocation8 + $0xa8] sm:$0xff]  ;;  %v1615_v10 = vld [vmem:[#allocation8 + $0x20] sm:$0xff] }
  0xc5   : > { %2517 = vmatprep.subr.mxu1 %v1100_v46  ;;  %1294 = vmatprep.mubr.f32.mxu0 %v1007_v16  ;;  %v1631_v16 = vld [vmem:[#allocation8 + $0xa0] sm:$0xff]  ;;  %v1614_v46 = vld [vmem:[#allocation8 + $0x18] sm:$0xff] }
  0xc6   : > { %2518 = vmatpush3.msra.mxu1 %v1084_v53  ;;  %1295 = vmatmul.mubr.f32.gmra.mxu0 %v1006_v18  ;;  %v1630_v18 = vld [vmem:[#allocation8 + $0x98] sm:$0xff]  ;;  %v1613_v53 = vld [vmem:[#allocation8 + $0x10] sm:$0xff] }
  0xc7   : > { %1215 = vmatmul.mubr.f32.gmra.mxu1 %v1011_v20  ;;  %2519 = vmatprep.subr.mxu1 %v1099_v12  ;;  %v1629_v20 = vld [vmem:[#allocation8 + $0x90] sm:$0xff]  ;;  %v1612_v12 = vld [vmem:[#allocation8 + $0x8] sm:$0xff] }
  0xc8   : > { %2520 = vmatpush3.msra.mxu1 %v1083_v17  ;;  %1299 = vmatprep.mubr.f32.mxu0 %v1014_v21  ;;  %v1628_v21 = vld [vmem:[#allocation8 + $0x88] sm:$0xff]  ;;  %v1611_v17 = vld [vmem:[#allocation8] sm:$0xff] }
  0xc9   : > { %2521 = vmatprep.subr.mxu1 %v1098_v56  ;;  %1369 = vmatprep.mubr.f32.mxu1 %v995_v22  ;;  %v1627_v22 = vld [vmem:[#allocation8 + $0x80] sm:$0xff] }
  0xca   : > { %2522 = vmatpush3.msra.mxu1 %v1082_v19  ;;  %1300 = vmatmul.mubr.f32.gmra.mxu0 %v1013_v26  ;;  %v3446_v26 = vld [vmem:[%s3742_s9 + $0x78] sm:$0xff] }
  0xcb   : > { %1370 = vmatmul.mubr.f32.vlgmr.msra.gmra.mxu1 %v994_v28  ;;  %2679 = vmatprep.subr.mxu0 %v1115_v9 }
  0xcc   : > { %2680 = vmatpush3.msra.mxu0 %v1115_v9  ;;  %1374 = vmatprep.mubr.f32.mxu1 %v1002_v29 }
  0xcd   : > { %2681 = vmatprep.subr.mxu0 %v1114_v25  ;;  %2683 = vmatprep.mubr.msk.f32.mxu0 %vm637_vm0, %v996_v31 }
  0xce   : > { %2682 = vmatpush3.msra.mxu0 %v1114_v25  ;;  %2561 = vmatprep.subr.mxu1 %v1642_v55 }
  0xcf   : > { %1375 = vmatmul.mubr.f32.gmra.mxu1 %v1001_v33  ;;  %2684 = vmatmul.mubr.msk.f32.vlgmr.msra.gmra.mxu0 %vm637_vm0, %v1003_v13 }
  0xd0   : > { %1379 = vmatprep.mubr.f32.mxu1 %v1009_v15  ;;  %2686 = vmatprep.mubr.msk.f32.mxu0 %vm637_vm0, %v1010_v35 }
  0xd1   : > { %2689 = vmatprep.subr.mxu0 %v1510_v27  ;;  %2562 = vmatpush3.msra.mxu1 %v1626_v57 }
  0xd2   : > { %2690 = vmatpush3.msra.mxu0 %v1510_v27  ;;  %2563 = vmatprep.subr.mxu1 %v1641_v58 }
  0xd3   : > { %1380 = vmatmul.mubr.f32.gmra.mxu1 %v1008_v32  ;;  %2687 = vmatmul.mubr.msk.f32.gmra.mxu0 %vm637_vm0, %v1017_v24 }
  0xd4   : > { %1384 = vmatprep.mubr.f32.mxu1 %v1016_v34  ;;  %2691 = vmatprep.subr.mxu0 %v1509_v47 }
  0xd5   : > { %2692 = vmatpush3.msra.mxu0 %v1509_v47  ;;  %2564 = vmatpush3.msra.mxu1 %v1625_v59  ;;  %v2237_v47 = vld [vmem:[%s3736_s3] ss:$0 sm:$0xff] }
  0xd6   : > { %2693 = vmatprep.subr.mxu0 %v1508_v37  ;;  %2565 = vmatprep.subr.mxu1 %v1640_v60 }
  0xd7   : > { %1385 = vmatmul.mubr.f32.gmra.mxu1 %v1015_v36  ;;  %2694 = vmatpush3.msra.mxu0 %v1508_v37 }
  0xd8   : > { %2695 = vmatprep.subr.mxu0 %v1507_v51  ;;  %2566 = vmatpush3.msra.mxu1 %v1624_v61 }
  0xd9   : > { %2696 = vmatpush3.msra.mxu0 %v1507_v51  ;;  %2567 = vmatprep.subr.mxu1 %v1639_v62 }
  0xda   : > { %2697 = vmatprep.subr.mxu0 %v1506_v45  ;;  %2568 = vmatpush3.msra.mxu1 %v1623_v0 }
  0xdb   : > { %2698 = vmatpush3.msra.mxu0 %v1506_v45  ;;  %2569 = vmatprep.subr.mxu1 %v1638_v63 }
  0xdc   : > { %2699 = vmatprep.subr.mxu0 %v1505_v38  ;;  %2570 = vmatpush3.msra.mxu1 %v1622_v4 }
  0xdd   : > { %2700 = vmatpush3.msra.mxu0 %v1505_v38  ;;  %2571 = vmatprep.subr.mxu1 %v1637_v6  ;;  %v3052_v6 = vmov 0.0  }
  0xde   : > { %2701 = vmatprep.subr.mxu0 %v1504_v39  ;;  %2572 = vmatpush3.msra.mxu1 %v1621_v23 }
  0xdf   : > { %2702 = vmatpush3.msra.mxu0 %v1504_v39  ;;  %2573 = vmatprep.subr.mxu1 %v1636_v7 }
  0xe0   : > { %2703 = vmatprep.subr.mxu0 %v1503_v50  ;;  %2574 = vmatpush3.msra.mxu1 %v1620_v1 }
  0xe1   : > { %2704 = vmatpush3.msra.mxu0 %v1503_v50  ;;  %2575 = vmatprep.subr.mxu1 %v1635_v8 }
  0xe2   : > { %2705 = vmatprep.subr.mxu0 %v1502_v40  ;;  %2576 = vmatpush3.msra.mxu1 %v1619_v3 }
  0xe3   : > { %2706 = vmatpush3.msra.mxu0 %v1502_v40  ;;  %2577 = vmatprep.subr.mxu1 %v1634_v11 }
  0xe4   : > { %2707 = vmatprep.subr.mxu0 %v1501_v41  ;;  %2578 = vmatpush3.msra.mxu1 %v1618_v30 }
  0xe5   : > { %2708 = vmatpush3.msra.mxu0 %v1501_v41  ;;  %2579 = vmatprep.subr.mxu1 %v1633_v14 }
  0xe6   : > { %2709 = vmatprep.subr.mxu0 %v1500_v42  ;;  %2580 = vmatpush3.msra.mxu1 %v1617_v43 }
  0xe7   : > { %2710 = vmatpush3.msra.mxu0 %v1500_v42  ;;  %2581 = vmatprep.subr.mxu1 %v1632_v2 }
  0xe8   : > { %2711 = vmatprep.subr.mxu0 %v1499_v44  ;;  %2582 = vmatpush3.msra.mxu1 %v1616_v5 }
  0xe9   : > { %2712 = vmatpush3.msra.mxu0 %v1499_v44  ;;  %2583 = vmatprep.subr.mxu1 %v1631_v16 }
  0xea   : > { %2713 = vmatprep.subr.mxu0 %v1498_v48  ;;  %2584 = vmatpush3.msra.mxu1 %v1615_v10 }
  0xeb   : > { %2714 = vmatpush3.msra.mxu0 %v1498_v48  ;;  %2585 = vmatprep.subr.mxu1 %v1630_v18 }
  0xec   : > { %2715 = vmatprep.subr.mxu0 %v1497_v49  ;;  %2586 = vmatpush3.msra.mxu1 %v1614_v46  ;;  %v1769_v46 = vld [vmem:[%s3742_s9 + $0x70] sm:$0xff] }
  0xed   : > { %2716 = vmatpush3.msra.mxu0 %v1497_v49  ;;  %2587 = vmatprep.subr.mxu1 %v1629_v20 }
  0xee   : > { %2717 = vmatprep.subr.mxu0 %v1496_v52  ;;  %2588 = vmatpush3.msra.mxu1 %v1613_v53 }
  0xef   : > { %2718 = vmatpush3.msra.mxu0 %v1496_v52  ;;  %2589 = vmatprep.subr.mxu1 %v1628_v21 }
  0xf0   : > { %2719 = vmatprep.subr.mxu0 %v1495_v54  ;;  %2590 = vmatpush3.msra.mxu1 %v1612_v12 }
  0xf1   : > { %2720 = vmatpush3.msra.mxu0 %v1495_v54  ;;  %2591 = vmatprep.subr.mxu1 %v1627_v22  ;;  %v1768_v22 = vld [vmem:[%s3742_s9 + $0x68] sm:$0xff] }
  0xf2   : > { %2592 = vmatpush3.msra.mxu1 %v1611_v17  ;;  %2727 = vmatprep.subr.mxu0 %v3446_v26 }
 0x133   : > { %v2297_v28 = vpop.f32.mrf.mxu0 }
 0x134   : > { %v2341_v56 = vpop.f32.mrf.mxu1 }
 0x135   : > { %v2298_v29 = vpop.f32.mrf.mxu0 }
 0x136   : > { %v2342_v19 = vpop.f32.mrf.mxu1  ;;  %v2299_v34 = vadd.f32 %v2298_v29, %v2297_v28 }
 0x137   : > { %v2343_v45 = vadd.f32 %v2342_v19, %v2341_v56  ;;  %v1767_v56 = vld [vmem:[%s3742_s9 + $0x60] sm:$0xff] }
 0x138   : > { %v2344_v9 = vpop.f32.mrf.mxu1  ;;  %v717_v51 = vadd.f32 %v2299_v34, %v2237_v47 }
 0x13a   : > { %v2345_v25 = vpop.f32.mrf.mxu1  ;;  %v802_v41 = vadd.f32 %v2343_v45, %v717_v51 }
 0x13b   : > { %v2346_v44 = vadd.f32 %v2345_v25, %v2344_v9 }
 0x13c   : > { %v2347_v33 = vpop.f32.mrf.mxu1 }
 0x13e   : > { %v2348_v27 = vpop.f32.mrf.mxu1 }
 0x13f   : > { %v2349_v62 = vadd.f32 %v2348_v27, %v2347_v33  ;;  %v1763_v33 = vld [vmem:[%s3742_s9 + $0x40] sm:$0xff] }
 0x140   : > { %v2350_v24 = vpop.f32.mrf.mxu1 }
 0x142   : > { %v2300_v31 = vpop.f32.mrf.mxu0  ;;  %v2351_v37 = vpop.f32.mrf.mxu1 }
 0x143   : > { %v2352_v14 = vadd.f32 %v2351_v37, %v2350_v24 }
 0x144   : > { %v2301_v13 = vpop.f32.mrf.mxu0  ;;  %v2675_v50 = vpop.f32.mrf.mxu1 }
 0x145   : > { %v2302_v38 = vadd.f32 %v2301_v13, %v2300_v31  ;;  %v1765_v31 = vld [vmem:[%s3742_s9 + $0x50] sm:$0xff]  ;;  %v1764_v13 = vld [vmem:[%s3742_s9 + $0x48] sm:$0xff] }
 0x146   : > { %v971_v54 = vpop.f32.mrf.mxu1 }
 0x147   : > { %v722_v42 = vadd.f32 %v2302_v38, %v2237_v47 }
 0x149   : > { %v807_v58 = vadd.f32 %v2346_v44, %v722_v42 }
 0x14a   : > { %v2303_v15 = vpop.f32.mrf.mxu0 }
 0x14c   : > { %v2304_v35 = vpop.f32.mrf.mxu0 }
 0x14d   : > { %v2305_v49 = vadd.f32 %v2304_v35, %v2303_v15  ;;  %v1762_v15 = vld [vmem:[%s3742_s9 + $0x38] sm:$0xff]  ;;  %v1761_v35 = vld [vmem:[%s3742_s9 + $0x30] sm:$0xff] }
 0x14f   : > { %v2306_v32 = vpop.f32.mrf.mxu0  ;;  %v727_v61 = vadd.f32 %v2305_v49, %v2237_v47 }
 0x151   : > { %v2307_v36 = vpop.f32.mrf.mxu0  ;;  %v812_v3 = vadd.f32 %v2349_v62, %v727_v61 }
 0x152   : > { %v2308_v0 = vadd.f32 %v2307_v36, %v2306_v32  ;;  %v1760_v32 = vld [vmem:[%s3742_s9 + $0x28] sm:$0xff] }
 0x154   : > { %v732_v30 = vadd.f32 %v2308_v0, %v2237_v47 }
 0x156   : > { %v2385_v39 = vpop.f32.mrf.mxu0  ;;  %v817_v20 = vadd.f32 %v2352_v14, %v732_v30 }
 0x158   : > { %v2386_v40 = vpop.f32.mrf.mxu0 }
 0x159   : > { %v2387_v48 = vadd.f32 %v2386_v40, %v2385_v39 }
 0x15a   : > { %v2388_v52 = vpop.f32.mrf.mxu0 }
 0x15b   : > { %v887_v55 = vadd.f32 %v2387_v48, %v802_v41 }
 0x15c   : > { %v2389_v57 = vpop.f32.mrf.mxu0 }
 0x15d   : > { %v2390_v59 = vadd.f32 %v2389_v57, %v2388_v52  ;;  %v972_v60 = vadd.f32 %v971_v54, %v887_v55 }
 0x15f   : > { %v892_v63 = vadd.f32 %v2390_v59, %v807_v58  ;;  %vm1475_vm1 = vcmp.gt.f32.partialorder %v972_v60, 0.0  ;;  %v2391_v4 = vpop.f32.mrf.mxu0 }
 0x160   : > { %v3453_v23 = vsel %vm1475_vm1, 1.0, %v3052_v6 }
 0x161   : > { %v977_v7 = vadd.f32 %v2675_v50, %v892_v63  ;;  %v3456_v1 = vmul.f32 %v3453_v23, %v972_v60  ;;  %v2392_v8 = vpop.f32.mrf.mxu0  ;;  %v2242_v50 = vld [vmem:[%s3737_s4] ss:$0 sm:$0xff] }
 0x162   : > { %v2393_v11 = vadd.f32 %v2392_v8, %v2391_v4 }
 0x163   : > { %vm1476_vm2 = vcmp.gt.f32.partialorder %v977_v7, 0.0  ;;  %2721 = vmatprep.mubr.f32.mxu0 %v3456_v1 }
 0x164   : > { %v3460_v43 = vsel %vm1476_vm2, 1.0, %v3052_v6  ;;  %v2394_v2 = vpop.f32.mrf.mxu0  ;;  %v897_v5 = vadd.f32 %v2393_v11, %v812_v3 }
 0x165   : > { %v3463_v16 = vmul.f32 %v3460_v43, %v977_v7  ;;  %v2678_v10 = vpop.f32.mrf.mxu1 }
 0x166   : > { %v2395_v18 = vpop.f32.mrf.mxu0 }
 0x167   : > { %v2396_v53 = vadd.f32 %v2395_v18, %v2394_v2  ;;  %v981_v21 = vpop.f32.mrf.mxu1  ;;  %2722 = vmatmul.mubr.f32.vlgmr.msra.gmra.mxu0 %v3463_v16 }
 0x168   : > { %v982_v12 = vadd.f32 %v981_v21, %v897_v5  ;;  %2728 = vmatpush3.msra.mxu0 %v3446_v26  ;;  %v1766_v26 = vld [vmem:[%s3742_s9 + $0x58] sm:$0xff] }
 0x169   : > { %v902_v17 = vadd.f32 %v2396_v53, %v817_v20  ;;  %2729 = vmatprep.subr.mxu0 %v1769_v46 }
 0x16a   : > { %vm1477_vm3 = vcmp.gt.f32.partialorder %v982_v12, 0.0  ;;  %2730 = vmatpush3.msra.mxu0 %v1769_v46  ;;  %v2435_v27 = vpop.f32.mrf.mxu1  ;;  %v1603_v46 = vmul.f32 %v3456_v1, %v3456_v1 }
 0x16b   : > { %v987_v28 = vadd.f32 %v2678_v10, %v902_v17  ;;  %v3477_v19 = vsel %vm1477_vm3, 1.0, %v3052_v6  ;;  %2731 = vmatprep.subr.mxu0 %v1768_v22 }
 0x16c   : > { %v3480_v29 = vmul.f32 %v3477_v19, %v982_v12  ;;  %2732 = vmatpush3.msra.mxu0 %v1768_v22  ;;  %v2436_v24 = vpop.f32.mrf.mxu1 }
 0x16d   : > { %vm1478_vm4 = vcmp.gt.f32.partialorder %v987_v28, 0.0  ;;  %2733 = vmatprep.subr.mxu0 %v1767_v56  ;;  %v2437_v38 = vadd.f32 %v2436_v24, %v2435_v27 }
 0x16e   : > { %2724 = vmatprep.mubr.f32.mxu0 %v3480_v29  ;;  %v3487_v9 = vsel %vm1478_vm4, 1.0, %v3052_v6  ;;  %2734 = vmatpush3.msra.mxu0 %v1767_v56 }
 0x16f   : > { %v3493_v25 = vmul.f32 %v3487_v9, %v987_v28  ;;  %2735 = vmatprep.subr.mxu0 %v1766_v26  ;;  %v1202_v44 = vadd.f32 %v2437_v38, %v2242_v50 }
 0x170   : > { %2736 = vmatpush3.msra.mxu0 %v1766_v26 }
 0x171   : > { %2725 = vmatmul.mubr.f32.gmra.mxu0 %v3493_v25  ;;  %2737 = vmatprep.subr.mxu0 %v1765_v31 }
 0x172   : > { %2738 = vmatpush3.msra.mxu0 %v1765_v31 }
 0x173   : > { %2739 = vmatprep.subr.mxu0 %v1764_v13 }
 0x174   : > { %2740 = vmatpush3.msra.mxu0 %v1764_v13 }
 0x175   : > { %2741 = vmatprep.subr.mxu0 %v1763_v33 }
 0x176   : > { %2742 = vmatpush3.msra.mxu0 %v1763_v33 }
 0x177   : > { %2743 = vmatprep.subr.mxu0 %v1762_v15 }
 0x178   : > { %2744 = vmatpush3.msra.mxu0 %v1762_v15 }
 0x179   : > { %2745 = vmatprep.subr.mxu0 %v1761_v35 }
 0x17a   : > { %2746 = vmatpush3.msra.mxu0 %v1761_v35 }
 0x17b   : > { %2747 = vmatprep.subr.mxu0 %v1760_v32 }
 0x17c   : > { %2748 = vmatpush3.msra.mxu0 %v1760_v32  ;;  %v1604_v32 = vmul.f32 %v3463_v16, %v3463_v16  ;;  %v1606_v16 = vmul.f32 %v3493_v25, %v3493_v25  ;;  %v1756_v25 = vld [vmem:[%s3742_s9 + $0x8] sm:$0xff] }
 0x17e   : > { %v2479_v34 = vpop.f32.mrf.mxu0 }
 0x17f   : > { %v2438_v47 = vpop.f32.mrf.mxu1 }
 0x180   : > { %v2480_v36 = vpop.f32.mrf.mxu0 }
 0x181   : > { %v2439_v37 = vpop.f32.mrf.mxu1  ;;  %v2481_v49 = vadd.f32 %v2480_v36, %v2479_v34  ;;  %v1605_v36 = vmul.f32 %v3480_v29, %v3480_v29  ;;  %v1759_v29 = vld [vmem:[%s3742_s9 + $0x20] sm:$0xff] }
 0x182   : > { %v2482_v51 = vpop.f32.mrf.mxu0  ;;  %v2440_v48 = vadd.f32 %v2439_v37, %v2438_v47  ;;  %2749 = vmatprep.subr.mxu0 %v1759_v29 }
 0x183   : > { %v2441_v45 = vpop.f32.mrf.mxu1  ;;  %v1287_v60 = vadd.f32 %v2481_v49, %v1202_v44  ;;  %2750 = vmatpush3.msra.mxu0 %v1759_v29  ;;  %v1885_v44 = vld [vmem:[%s3743_s10 + $0x70] sm:$0xff]  ;;  %v1884_v49 = vld [vmem:[%s3743_s10 + $0x68] sm:$0xff] }
 0x184   : > { %v2483_v39 = vpop.f32.mrf.mxu0  ;;  %v1207_v59 = vadd.f32 %v2440_v48, %v2242_v50  ;;  %v1900_v48 = vld [vmem:[%s3743_s10 + $0xe8] sm:$0xff] }
 0x185   : > { %v2442_v40 = vpop.f32.mrf.mxu1  ;;  %v2484_v61 = vadd.f32 %v2483_v39, %v2482_v51 }
 0x186   : > { %v2485_v41 = vpop.f32.mrf.mxu0  ;;  %v2443_v57 = vadd.f32 %v2442_v40, %v2441_v45  ;;  %v1902_v40 = vld [vmem:[%s3743_s10 + $0xf8] sm:$0xff] }
 0x187   : > { %v2444_v42 = vpop.f32.mrf.mxu1  ;;  %v1292_v11 = vadd.f32 %v2484_v61, %v1207_v59  ;;  %2625 = vmatprep.subr.mxu1 %v1902_v40  ;;  %v1881_v59 = vld [vmem:[%s3743_s10 + $0x50] sm:$0xff]  ;;  %v1880_v61 = vld [vmem:[%s3743_s10 + $0x48] sm:$0xff] }
 0x188   : > { %v2486_v52 = vpop.f32.mrf.mxu0  ;;  %v1212_v4 = vadd.f32 %v2443_v57, %v2242_v50  ;;  %v1882_v57 = vld [vmem:[%s3743_s10 + $0x58] sm:$0xff] }
 0x189   : > { %v2445_v54 = vpop.f32.mrf.mxu1  ;;  %v2487_v7 = vadd.f32 %v2486_v52, %v2485_v41  ;;  %v1886_v41 = vld [vmem:[%s3743_s10 + $0x78] sm:$0xff]  ;;  %v1899_v52 = vld [vmem:[%s3743_s10 + $0xe0] sm:$0xff] }
 0x18a   : > { %v2488_v55 = vpop.f32.mrf.mxu0  ;;  %v2446_v30 = vadd.f32 %v2445_v54, %v2444_v42  ;;  %v1901_v42 = vld [vmem:[%s3743_s10 + $0xf0] sm:$0xff]  ;;  %v1883_v54 = vld [vmem:[%s3743_s10 + $0x60] sm:$0xff] }
 0x18b   : > { %v2523_v58 = vpop.f32.mrf.mxu1  ;;  %v1297_v20 = vadd.f32 %v2487_v7, %v1212_v4  ;;  %v1878_v4 = vld [vmem:[%s3743_s10 + $0x38] sm:$0xff]  ;;  %v1893_v7 = vld [vmem:[%s3743_s10 + $0xb0] sm:$0xff] }
 0x18c   : > { %v2489_v62 = vpop.f32.mrf.mxu0  ;;  %v1217_v12 = vadd.f32 %v2446_v30, %v2242_v50  ;;  %v1755_v50 = vld [vmem:[%s3742_s9] sm:$0xff] }
 0x18d   : > { %v2524_v0 = vpop.f32.mrf.mxu1  ;;  %v2490_v22 = vadd.f32 %v2489_v62, %v2488_v55  ;;  %v1898_v55 = vld [vmem:[%s3743_s10 + $0xd8] sm:$0xff]  ;;  %v1895_v62 = vld [vmem:[%s3743_s10 + $0xc0] sm:$0xff] }
 0x18e   : > { %v2525_v63 = vadd.f32 %v2524_v0, %v2523_v58  ;;  %v1897_v58 = vld [vmem:[%s3743_s10 + $0xd0] sm:$0xff]  ;;  %v1879_v0 = vld [vmem:[%s3743_s10 + $0x40] sm:$0xff] }
 0x18f   : > { %v2526_v8 = vpop.f32.mrf.mxu1  ;;  %v2685_v3 = vpop.f32.mrf.mxu0  ;;  %v1302_v35 = vadd.f32 %v2490_v22, %v1217_v12  ;;  %v1891_v30 = vld [vmem:[%s3743_s10 + $0xa0] sm:$0xff] }
 0x190   : > { %v1372_v14 = vadd.f32 %v2525_v63, %v1287_v60  ;;  %v1896_v60 = vld [vmem:[%s3743_s10 + $0xc8] sm:$0xff]  ;;  %v1894_v63 = vld [vmem:[%s3743_s10 + $0xb8] sm:$0xff]  ;;  %v2251_v12 = vld [vmem:[%s3740_s7] ss:$0 sm:$0xff] }
 0x191   : > { %v2527_v2 = vpop.f32.mrf.mxu1  ;;  %v1456_v5 = vpop.f32.mrf.mxu0 }
 0x192   : > { %v2528_v10 = vadd.f32 %v2527_v2, %v2526_v8  ;;  %v1457_v18 = vadd.f32 %v1456_v5, %v1372_v14  ;;  %v1877_v8 = vld [vmem:[%s3743_s10 + $0x30] sm:$0xff]  ;;  %v1875_v14 = vld [vmem:[%s3743_s10 + $0x20] sm:$0xff]  ;;  %v1890_v2 = vld [vmem:[%s3743_s10 + $0x98] sm:$0xff] }
 0x193   : > { %v2529_v53 = vpop.f32.mrf.mxu1  ;;  %v2688_v21 = vpop.f32.mrf.mxu0  ;;  %v1874_v5 = vld [vmem:[%s3743_s10 + $0x18] sm:$0xff] }
 0x194   : > { %v1377_v17 = vadd.f32 %v2528_v10, %v1292_v11  ;;  %v1491_v56 = vmul.f32 %v3453_v23, %v1457_v18  ;;  %v1876_v11 = vld [vmem:[%s3743_s10 + $0x28] sm:$0xff]  ;;  %v1889_v10 = vld [vmem:[%s3743_s10 + $0x90] sm:$0xff] }
 0x195   : > { %v2530_v28 = vpop.f32.mrf.mxu1  ;;  %v1466_v15 = vpop.f32.mrf.mxu0  ;;  %v1873_v18 = vld [vmem:[%s3743_s10 + $0x10] sm:$0xff] }
 0x196   : > { %v1462_v26 = vadd.f32 %v2685_v3, %v1377_v17  ;;  %v1607_v31 = vadd.f32 %v1603_v46, %v1491_v56  ;;  %v2531_v13 = vadd.f32 %v2530_v28, %v2529_v53  ;;  %1714 = vmatprep.mubr.f32.mxu1 %v1491_v56  ;;  %v1892_v3 = vld [vmem:[%s3743_s10 + $0xa8] sm:$0xff]  ;;  %v1887_v53 = vld [vmem:[%s3743_s10 + $0x80] sm:$0xff] }
 0x197   : > { %v2532_v33 = vpop.f32.mrf.mxu1  ;;  %v1888_v46 = vld [vmem:[%s3743_s10 + $0x88] sm:$0xff] }
 0x198   : > { %1715 = vmatmul.mubr.f32.vlgmr.msra.gmra.mxu1 %v1607_v31  ;;  %v1382_v27 = vadd.f32 %v2531_v13, %v1297_v20  ;;  %v1492_v1 = vmul.f32 %v3460_v43, %v1462_v26  ;;  %v1872_v20 = vld [vmem:[%s3743_s10 + $0x8] sm:$0xff] }
 0x199   : > { %v2533_v24 = vpop.f32.mrf.mxu1  ;;  %2626 = vmatpush3.msra.mxu1 %v1886_v41 }
 0x19a   : > { %v2534_v34 = vadd.f32 %v2533_v24, %v2532_v33  ;;  %v1467_v47 = vadd.f32 %v1466_v15, %v1382_v27  ;;  %1719 = vmatprep.mubr.f32.mxu1 %v1492_v1  ;;  %v1608_v23 = vadd.f32 %v1604_v32, %v1492_v1  ;;  %2627 = vmatprep.subr.mxu1 %v1901_v42 }
 0x19b   : > { %2628 = vmatpush3.msra.mxu1 %v1885_v44 }
 0x19c   : > { %v1387_v37 = vadd.f32 %v2534_v34, %v1302_v35  ;;  %v1493_v51 = vmul.f32 %v3477_v19, %v1467_v47  ;;  %1720 = vmatmul.mubr.f32.gmra.mxu1 %v1608_v23  ;;  %v1758_v19 = vld [vmem:[%s3742_s9 + $0x18] sm:$0xff]  ;;  %2629 = vmatprep.subr.mxu1 %v1900_v48 }
 0x19d   : > { %2751 = vmatprep.subr.mxu0 %v1758_v19  ;;  %2630 = vmatpush3.msra.mxu1 %v1884_v49 }
 0x19e   : > { %v1472_v45 = vadd.f32 %v2688_v21, %v1387_v37  ;;  %1724 = vmatprep.mubr.f32.mxu1 %v1493_v51  ;;  %v1609_v38 = vadd.f32 %v1605_v36, %v1493_v51  ;;  %2752 = vmatpush3.msra.mxu0 %v1758_v19  ;;  %v1871_v21 = vld [vmem:[%s3743_s10] sm:$0xff] }
 0x19f   : > { %2631 = vmatprep.subr.mxu1 %v1899_v52  ;;  %v2252_v36 = vld [vmem:[%s3741_s8] ss:$0 sm:$0xff] }
 0x1a0   : > { %1725 = vmatmul.mubr.f32.gmra.mxu1 %v1609_v38  ;;  %v1494_v43 = vmul.f32 %v3487_v9, %v1472_v45  ;;  %v1757_v9 = vld [vmem:[%s3742_s9 + $0x10] sm:$0xff] }
 0x1a1   : > { %2753 = vmatprep.subr.mxu0 %v1757_v9  ;;  %2632 = vmatpush3.msra.mxu1 %v1883_v54 }
 0x1a2   : > { %1729 = vmatprep.mubr.f32.mxu1 %v1494_v43  ;;  %v1610_v39 = vadd.f32 %v1606_v16, %v1494_v43  ;;  %2754 = vmatpush3.msra.mxu0 %v1757_v9 }
 0x1a3   : > { %2755 = vmatprep.subr.mxu0 %v1756_v25  ;;  %2633 = vmatprep.subr.mxu1 %v1898_v55 }
 0x1a4   : > { %1730 = vmatmul.mubr.f32.gmra.mxu1 %v1610_v39  ;;  %2756 = vmatpush3.msra.mxu0 %v1756_v25 }
 0x1a5   : > { %2757 = vmatprep.subr.mxu0 %v1755_v50  ;;  %2634 = vmatpush3.msra.mxu1 %v1882_v57 }
 0x1a6   : > { %2758 = vmatpush3.msra.mxu0 %v1755_v50  ;;  %2635 = vmatprep.subr.mxu1 %v1897_v58 }
 0x1a7   : > { %2636 = vmatpush3.msra.mxu1 %v1881_v59 }
 0x1a8   : > { %2637 = vmatprep.subr.mxu1 %v1896_v60 }
 0x1a9   : > { %2638 = vmatpush3.msra.mxu1 %v1880_v61 }
 0x1aa   : > { %2639 = vmatprep.subr.mxu1 %v1895_v62 }
 0x1ab   : > { %2640 = vmatpush3.msra.mxu1 %v1879_v0  ;;  %v2257_v0 = vld [vmem:[%s3744_s11] ss:$0 sm:$0xff] }
 0x1ac   : > { %2641 = vmatprep.subr.mxu1 %v1894_v63 }
 0x1ad   : > { %2642 = vmatpush3.msra.mxu1 %v1878_v4 }
 0x1ae   : > { %2643 = vmatprep.subr.mxu1 %v1893_v7 }
 0x1af   : > { %2644 = vmatpush3.msra.mxu1 %v1877_v8 }
 0x1b0   : > { %2645 = vmatprep.subr.mxu1 %v1892_v3 }
 0x1b1   : > { %2646 = vmatpush3.msra.mxu1 %v1876_v11 }
 0x1b2   : > { %2647 = vmatprep.subr.mxu1 %v1891_v30 }
 0x1b3   : > { %2648 = vmatpush3.msra.mxu1 %v1875_v14 }
 0x1b4   : > { %2649 = vmatprep.subr.mxu1 %v1890_v2 }
 0x1b5   : > { %2650 = vmatpush3.msra.mxu1 %v1874_v5 }
 0x1b6   : > { %2651 = vmatprep.subr.mxu1 %v1889_v10 }
 0x1b7   : > { %2652 = vmatpush3.msra.mxu1 %v1873_v18 }
 0x1b8   : > { %2653 = vmatprep.subr.mxu1 %v1888_v46 }
 0x1b9   : > { %2654 = vmatpush3.msra.mxu1 %v1872_v20 }
 0x1ba   : > { %2655 = vmatprep.subr.mxu1 %v1887_v53 }
 0x1bb   : > { %2656 = vmatpush3.msra.mxu1 %v1871_v21 }
 0x227   : > { %v2723_v22 = vpop.f32.mrf.mxu0 }
 0x228   : > { %v1590_v17 = vadd.f32 %v2723_v22, %v2251_v12 }
 0x229   : > { %v1584_v56 = vpop.f32.mrf.mxu0 }
 0x22a   : > { %vm1736_vm5 = vcmp.gt.f32.partialorder %v1590_v17, 0.0  ;;  %v1585_v28 = vadd.f32 %v2251_v12, %v1584_v56 }
 0x22b   : > { %v2254_v26 = vsel %vm1736_vm5, 1.0, %v3052_v6 }
 0x22c   : > { %vm1735_vm6 = vcmp.gt.f32.partialorder %v1585_v28, 0.0  ;;  %v1748_v33 = vmul.f32 %v2254_v26, %v1590_v17 }
 0x22d   : > { %v2253_v31 = vsel %vm1735_vm6, 1.0, %v3052_v6 }
 0x22e   : > { %v1747_v13 = vmul.f32 %v2253_v31, %v1585_v28  ;;  %v1864_v50 = vmul.f32 %v1748_v33, %v1748_v33 }
 0x230   : > { %2759 = vmatprep.mubr.f32.mxu0 %v1747_v13  ;;  %v1863_v16 = vmul.f32 %v1747_v13, %v1747_v13 }
 0x231   : > { %v2726_v15 = vpop.f32.mrf.mxu0  ;;  %2760 = vmatmul.mubr.f32.vlgmr.msra.gmra.mxu0 %v1748_v33 }
 0x232   : > { %v1600_v35 = vadd.f32 %v2726_v15, %v2251_v12 }
 0x233   : > { %v1594_v27 = vpop.f32.mrf.mxu0 }
 0x234   : > { %vm1738_vm7 = vcmp.gt.f32.partialorder %v1600_v35, 0.0  ;;  %v1595_v1 = vadd.f32 %v2251_v12, %v1594_v27 }
 0x235   : > { %v2256_v32 = vsel %vm1738_vm7, 1.0, %v3052_v6 }
 0x236   : > { %vm1737_vm8 = vcmp.gt.f32.partialorder %v1595_v1, 0.0  ;;  %v1750_v47 = vmul.f32 %v2256_v32, %v1600_v35 }
 0x237   : > { %v2255_v24 = vsel %vm1737_vm8, 1.0, %v3052_v6 }
 0x238   : > { %v1749_v34 = vmul.f32 %v2255_v24, %v1595_v1  ;;  %v1866_v59 = vmul.f32 %v1750_v47, %v1750_v47 }
 0x23a   : > { %2762 = vmatprep.mubr.f32.mxu0 %v1749_v34  ;;  %v1865_v52 = vmul.f32 %v1749_v34, %v1749_v34 }
 0x23b   : > { %2763 = vmatmul.mubr.f32.gmra.mxu0 %v1750_v47 }
 0x258   : > { %v2593_v23 = vpop.f32.mrf.mxu1 }
 0x25a   : > { %v2594_v37 = vpop.f32.mrf.mxu1 }
 0x25b   : > { %v2595_v51 = vadd.f32 %v2594_v37, %v2593_v23 }
 0x25c   : > { %v2596_v45 = vpop.f32.mrf.mxu1 }
 0x25d   : > { %v1717_v38 = vadd.f32 %v2595_v51, %v2252_v36 }
 0x25e   : > { %v2597_v43 = vpop.f32.mrf.mxu1 }
 0x25f   : > { %v2598_v39 = vadd.f32 %v2597_v43, %v2596_v45  ;;  %v1751_v29 = vmul.f32 %v2253_v31, %v1717_v38 }
 0x260   : > { %v2599_v19 = vpop.f32.mrf.mxu1 }
 0x261   : > { %v1722_v9 = vadd.f32 %v2598_v39, %v2252_v36  ;;  %v1867_v6 = vadd.f32 %v1863_v16, %v1751_v29  ;;  %1974 = vmatprep.mubr.f32.mxu1 %v1751_v29  ;;  %v2258_v39 = vld [vmem:[%s3745_s12] ss:$0 sm:$0xff] }
 0x262   : > { %v2600_v25 = vpop.f32.mrf.mxu1 }
 0x263   : > { %v2601_v40 = vadd.f32 %v2600_v25, %v2599_v19  ;;  %1975 = vmatmul.mubr.f32.vlgmr.msra.gmra.mxu1 %v1867_v6  ;;  %v1752_v41 = vmul.f32 %v2254_v26, %v1722_v9 }
 0x264   : > { %v2602_v42 = vpop.f32.mrf.mxu1 }
 0x265   : > { %v1727_v44 = vadd.f32 %v2601_v40, %v2252_v36  ;;  %1979 = vmatprep.mubr.f32.mxu1 %v1752_v41  ;;  %v1868_v48 = vadd.f32 %v1864_v50, %v1752_v41 }
 0x266   : > { %v2603_v49 = vpop.f32.mrf.mxu1 }
 0x267   : > { %v2604_v54 = vadd.f32 %v2603_v49, %v2602_v42  ;;  %1980 = vmatmul.mubr.f32.gmra.mxu1 %v1868_v48  ;;  %v1753_v55 = vmul.f32 %v2255_v24, %v1727_v44 }
 0x269   : > { %v1732_v57 = vadd.f32 %v2604_v54, %v2252_v36  ;;  %1984 = vmatprep.mubr.f32.mxu1 %v1753_v55  ;;  %v1869_v58 = vadd.f32 %v1865_v52, %v1753_v55 }
 0x26b   : > { %1985 = vmatmul.mubr.f32.gmra.mxu1 %v1869_v58  ;;  %v1754_v60 = vmul.f32 %v2256_v32, %v1732_v57 }
 0x26d   : > { %1989 = vmatprep.mubr.f32.mxu1 %v1754_v60  ;;  %v1870_v61 = vadd.f32 %v1866_v59, %v1754_v60 }
 0x26f   : > { %1990 = vmatmul.mubr.f32.gmra.mxu1 %v1870_v61 }
 0x2f1   : > { %v2761_v62 = vpop.f32.mrf.mxu0 }
 0x2f2   : > { %v1850_v7 = vadd.f32 %v2761_v62, %v2257_v0 }
 0x2f3   : > { %v1844_v63 = vpop.f32.mrf.mxu0 }
 0x2f4   : > { %v1845_v4 = vadd.f32 %v2257_v0, %v1844_v63  ;;  %v1999_v3 = vsel %vm1995_vm9, %v1850_v7, -inf }
 0x2f6   : > { %v1996_v8 = vsel %vm1995_vm9, %v1845_v4, -inf }
 0x2f7   : > { %1997 = vmax.xlane.f32.xlu0 %v1996_v8 }
 0x2fb   : > { %v2764_v11 = vpop.f32.mrf.mxu0  ;;  %2000 = vmax.xlane.f32.xlu0 %v1999_v3 }
 0x2fc   : > { %v1860_v2 = vadd.f32 %v2764_v11, %v2257_v0 }
 0x2fd   : > { %v1854_v30 = vpop.f32.mrf.mxu0 }
 0x2fe   : > { %v1855_v14 = vadd.f32 %v2257_v0, %v1854_v30  ;;  %v2005_v10 = vsel %vm1995_vm9, %v1860_v2, -inf }
 0x300   : > { %v2002_v5 = vsel %vm1995_vm9, %v1855_v14, -inf }
 0x301   : > { %2003 = vmax.xlane.f32.xlu1 %v2002_v5 }
 0x305   : > { %2006 = vmax.xlane.f32.xlu1 %v2005_v10 }
 0x323   : > { %v2657_v34 = vpop.f32.mrf.mxu1 }
 0x325   : > { %v2658_v47 = vpop.f32.mrf.mxu1 }
 0x326   : > { %v2659_v43 = vadd.f32 %v2658_v47, %v2657_v34 }
 0x327   : > { %v2660_v36 = vpop.f32.mrf.mxu1 }
 0x328   : > { %v1977_v25 = vadd.f32 %v2659_v43, %v2258_v39 }
 0x329   : > { %v2661_v51 = vpop.f32.mrf.mxu1 }
 0x32a   : > { %v2662_v6 = vadd.f32 %v2661_v51, %v2660_v36 }
 0x32b   : > { %v2663_v38 = vpop.f32.mrf.mxu1 }
 0x32c   : > { %v1982_v52 = vadd.f32 %v2662_v6, %v2258_v39 }
 0x32d   : > { %v2664_v19 = vpop.f32.mrf.mxu1 }
 0x32e   : > { %v2665_v59 = vadd.f32 %v2664_v19, %v2663_v38 }
 0x32f   : > { %v2666_v42 = vpop.f32.mrf.mxu1 }
 0x330   : > { %v1987_v3 = vadd.f32 %v2665_v59, %v2258_v39 }
 0x331   : > { %v2667_v60 = vpop.f32.mrf.mxu1 }
 0x332   : > { %v2668_v8 = vadd.f32 %v2667_v60, %v2666_v42 }
 0x380   : > { %v1998_v18 = vpop.xlane.xlu0 %1997 }
 0x381   : > { %v2008_v46 = vsub.f32 %v1845_v4, %v1998_v18  ;;  %v1992_v18 = vadd.f32 %v2668_v8, %v2258_v39 }
 0x383   : > { %v2012_v20 = vmul.f32 1.442695, %v2008_v46 }
 0x384   : > { %v2001_v53 = vpop.xlane.xlu0 %2000 }
 0x385   : > { %2852 = vpow2.f32 %v2012_v20  ;;  %v2009_v21 = vsub.f32 %v1850_v7, %v2001_v53 }
 0x387   : > { %v2014_v12 = vmul.f32 1.442695, %v2009_v21 }
 0x389   : > { %2854 = vpow2.f32 %v2014_v12 }
 0x38a   : > { %v2004_v22 = vpop.xlane.xlu1 %2003 }
 0x38b   : > { %v2010_v17 = vsub.f32 %v1855_v14, %v2004_v22 }
 0x38d   : > { %v2016_v56 = vmul.f32 1.442695, %v2010_v17 }
 0x38e   : > { %v2007_v28 = vpop.xlane.xlu1 %2006 }
 0x38f   : > { %2856 = vpow2.f32 %v2016_v56  ;;  %v2011_v26 = vsub.f32 %v1860_v2, %v2007_v28 }
 0x391   : > { %v2018_v31 = vmul.f32 1.442695, %v2011_v26 }
 0x392   : > { %v2853_v13 = vpop.eup %2852 }
 0x393   : > { %2858 = vpow2.f32 %v2018_v31  ;;  %v2020_v33 = vsel %vm1995_vm9, %v2853_v13, 0.0 }
 0x394   : > { %2021 = vadd.xlane.f32.xlu0 %v2020_v33 }
 0x396   : > { %v2855_v15 = vpop.eup %2854 }
 0x397   : > { %v2023_v35 = vsel %vm1995_vm9, %v2855_v15, 0.0 }
 0x398   : > { %2024 = vadd.xlane.f32.xlu1 %v2023_v35 }
 0x39c   : > { %v2857_v27 = vpop.eup %2856 }
 0x39d   : > { %v2026_v1 = vsel %vm1995_vm9, %v2857_v27, 0.0 }
 0x39e   : > { %2027 = vadd.xlane.f32.xlu0 %v2026_v1 }
 0x3a0   : > { %v2859_v32 = vpop.eup %2858 }
 0x3a1   : > { %v2029_v24 = vsel %vm1995_vm9, %v2859_v32, 0.0 }
 0x3a2   : > { %2030 = vadd.xlane.f32.xlu1 %v2029_v24 }
 0x41d   : > { %v2022_v23 = vpop.xlane.xlu0 %2021 }
 0x41e   : > { %2860 = vrcp.f32 %v2022_v23 }
 0x421   : > { %v2025_v37 = vpop.xlane.xlu1 %2024 }
 0x422   : > { %2862 = vrcp.f32 %v2025_v37 }
 0x427   : > { %v2028_v45 = vpop.xlane.xlu0 %2027 }
 0x428   : > { %2864 = vrcp.f32 %v2028_v45 }
 0x42b   : > { %v2861_v16 = vpop.eup %2860  ;;  %v2031_v29 = vpop.xlane.xlu1 %2030 }
 0x42c   : > { %2866 = vrcp.f32 %v2031_v29  ;;  %v2033_v9 = vmul.f32 %v2861_v16, %v2853_v13 }
 0x42e   : > { %v2040_v50 = vmul.f32 %v2033_v9, %v2033_v9  ;;  %v2060_v40 = vmul.f32 2.0, %v2033_v9  ;;  %2080 = vst.msk [vmem:[%s3664_s30] sm:$0xff] %vm1995_vm9, %v2033_v9 }
 0x42f   : > { %v2863_v41 = vpop.eup %2862 }
 0x430   : > { %v2044_v44 = vmul.f32 %v2040_v50, %v1977_v25  ;;  %v2035_v48 = vmul.f32 %v2863_v41, %v2855_v15  ;;  %v2064_v49 = vsub.f32 1.0, %v2060_v40 }
 0x432   : > { %v2048_v54 = vsel %vm1995_vm9, %v2044_v44, 0.0  ;;  %v2041_v55 = vmul.f32 %v2035_v48, %v2035_v48  ;;  %v2068_v57 = vmul.f32 %v2064_v49, %v1977_v25  ;;  %v2061_v58 = vmul.f32 2.0, %v2035_v48  ;;  %2081 = vst.msk [vmem:[%s3664_s30 + $0x8] sm:$0xff] %vm1995_vm9, %v2035_v48 }
 0x433   : > { %2049 = vadd.xlane.f32.xlu0 %v2048_v54 }
 0x434   : > { %v2045_v61 = vmul.f32 %v2041_v55, %v1982_v52  ;;  %v2065_v62 = vsub.f32 1.0, %v2061_v58 }
 0x435   : > { %v2865_v0 = vpop.eup %2864 }
 0x436   : > { %v2051_v63 = vsel %vm1995_vm9, %v2045_v61, 0.0  ;;  %v2037_v4 = vmul.f32 %v2865_v0, %v2857_v27  ;;  %v2069_v7 = vmul.f32 %v2065_v62, %v1982_v52 }
 0x437   : > { %2052 = vadd.xlane.f32.xlu1 %v2051_v63 }
 0x438   : > { %v2042_v11 = vmul.f32 %v2037_v4, %v2037_v4  ;;  %v2062_v30 = vmul.f32 2.0, %v2037_v4  ;;  %2082 = vst.msk [vmem:[%s3664_s30 + $0x10] sm:$0xff] %vm1995_vm9, %v2037_v4 }
 0x439   : > { %v2867_v14 = vpop.eup %2866 }
 0x43a   : > { %v2046_v2 = vmul.f32 %v2042_v11, %v1987_v3  ;;  %v2039_v5 = vmul.f32 %v2867_v14, %v2859_v32  ;;  %v2066_v10 = vsub.f32 1.0, %v2062_v30 }
 0x43c   : > { %v2054_v46 = vsel %vm1995_vm9, %v2046_v2, 0.0  ;;  %v2043_v20 = vmul.f32 %v2039_v5, %v2039_v5  ;;  %v2070_v53 = vmul.f32 %v2066_v10, %v1987_v3  ;;  %v2063_v21 = vmul.f32 2.0, %v2039_v5  ;;  %2083 = vst.msk [vmem:[%s3664_s30 + $0x18] sm:$0xff] %vm1995_vm9, %v2039_v5 }
 0x43d   : > { %2055 = vadd.xlane.f32.xlu0 %v2054_v46 }
 0x43e   : > { %v2047_v12 = vmul.f32 %v2043_v20, %v1992_v18  ;;  %v2067_v22 = vsub.f32 1.0, %v2063_v21 }
 0x440   : > { %v2057_v17 = vsel %vm1995_vm9, %v2047_v12, 0.0  ;;  %v2071_v56 = vmul.f32 %v2067_v22, %v1992_v18 }
 0x441   : > { %2058 = vadd.xlane.f32.xlu1 %v2057_v17 }
 0x4bc   : > { %v2050_v28 = vpop.xlane.xlu0 %2049 }
 0x4bd   : > { %v2072_v26 = vadd.f32 %v2068_v57, %v2050_v28 }
 0x4bf   : > { %v2076_v31 = vmul.f32 %v2072_v26, %v2040_v50 }
 0x4c0   : > { %v2053_v13 = vpop.xlane.xlu1 %2052 }
 0x4c1   : > { %v2073_v33 = vadd.f32 %v2069_v7, %v2053_v13  ;;  %2088 = vrot.lane.b32.xlu0 %v2076_v31, %s3053_s15 }
 0x4c3   : > { %v2077_v15 = vmul.f32 %v2073_v33, %v2041_v55 }
 0x4c5   : > { %2090 = vrot.lane.b32.xlu1 %v2077_v15, %s3053_s15 }
 0x4c6   : > { %v2056_v35 = vpop.xlane.xlu0 %2055 }
 0x4c7   : > { %v2074_v27 = vadd.f32 %v2070_v53, %v2056_v35 }
 0x4c9   : > { %v2078_v1 = vmul.f32 %v2074_v27, %v2042_v11 }
 0x4ca   : > { %v2059_v32 = vpop.xlane.xlu1 %2058 }
 0x4cb   : > { %v2075_v24 = vadd.f32 %v2071_v56, %v2059_v32  ;;  %2092 = vrot.lane.b32.xlu1 %v2078_v1, %s3053_s15 }
 0x4cd   : > { %v2079_v34 = vmul.f32 %v2075_v24, %v2043_v20 }
 0x4cf   : > { %2094 = vrot.lane.b32.xlu1 %v2079_v34, %s3053_s15 }
 0x533   : > { %v2089_v47 = vpop.permute.xlu0 %2088 }
 0x534   : > { %2101 = vst.msk [vmem:[%s3664_s30] sm:$0xff] %vm2100_vm10, %v2089_v47 }
 0x537   : > { %v2091_v23 = vpop.permute.xlu1 %2090 }
 0x538   : > { %2102 = vst.msk [vmem:[%s3664_s30 + $0x8] sm:$0xff] %vm2100_vm10, %v2091_v23 }
 0x53d   : > { %v2093_v36 = vpop.permute.xlu1 %2092 }
 0x53e   : > { %2103 = vst.msk [vmem:[%s3664_s30 + $0x10] sm:$0xff] %vm2100_vm10, %v2093_v36 }
 0x541   : > { %v2095_v37 = vpop.permute.xlu1 %2094 }
 0x542   : > { %2104 = vst.msk [vmem:[%s3664_s30 + $0x18] sm:$0xff] %vm2100_vm10, %v2095_v37 }
 0x543   : > { %2985 = shalt.err (!%p2982_p11)
}
 0x544   : > { %s2986_s27 = scalar_lea.hbm %s3686_s21, 512  ;;  %s2990_s16 = scalar_lea.hbm %s3746_s13, 1024 }
 0x545   : > { %p2987_p0 = scmp.ne.s32.totalorder %s3686_s21, %s2986_s27  ;;  %p2991_p3 = scmp.lt.s32.totalorder %s3686_s21, %s3746_s13 }
 0x546   : > { %p2992_p9 = scmp.lt.s32.totalorder %s2990_s16, %s2986_s27 }
 0x547   : > { %p2988_p2 = pnand %p2987_p0, %p3165_p5 }
 0x548   : > { %p2993_p10 = por %p2992_p9, %p2991_p3 }
 0x549   : > { %p2989_p1 = pneg %p2988_p2 }
 0x54b   : > { %p2994_p12 = pnand %p2993_p10, %p2989_p1 }
 0x54d   : > { %2997 = shalt.err (!%p2994_p12)
}
 0x54e   : > { %s3055_s14 = smov 128   ;;  %s3056_s29 = smov 8  }
 0x54f   : > { %2782 = dma.vmem_to_hbm [thread:$0]  (%p3165_p5), %s3688_s17, 512, %s3686_s21, %s3693_s24, %s3055_s14, %s3055_s14, %s3056_s29  }
 0x550 PF: > { %p2809_p13 = scmp.ge.s32.totalorder %s3044_s28, 2  ;;  %s2134_s22 = sand.u32 1, %s3032_s25  }
 0x551   : > { %s2135_s27 = scalar_lea.sflag [#allocation4], %s2134_s22 }
 0x552   : > { %p2798_p4 = pnand %p2809_p13, %p3169_p6 }
 0x554   : > { %p2799_p7 = pneg %p2798_p4 }
 0x556   : > { %3027 = dma.done.wait (%p2799_p7), %s2135_s27, 512  }
 0x557   : > { %3029 = vsyncadd (%p2799_p7), %s2135_s27, 4294966784  ;;  %s3761_s28 = sld [smem:[#allocation16_spill]]  ;;  %s3764_s25 = smov %s3036_s26 }
 0x558   : > { %s3762_s30 = sld [smem:[#allocation15_spill]] }
 0x559   : > { %s3763_s27 = sld [smem:[#allocation17_spill]] }
 0x55d   : > { %p26_p8 = scmp.ge.s32.totalorder %s3761_s28, 4  }
 0x55e   : > { %s3765_s26 = smov %s3762_s30 }
 0x55f   :  { %28 = sbr.rel (!%p26_p8) target bundleno = 6 (0x6), region = 124 }
 0x564   :  { %2140 = vsyncpa [#allocation3], 1 }
 0x565   :  { %2142 = vsyncpa [#allocation3 + $0x1], 1 }
 0x566   :  { %2143 = vsyncpa [#allocation6], 1 }
 0x567   :  { %2144 = vsyncpa [#allocation9], 1 }
 0x568   :  { %2145 = vsyncpa [#allocation4], 1 }
 0x569   :  { %2147 = vsyncpa [#allocation4 + $0x1], 1 }

</bundles_post_ra>
